<compile_context>
chip_gen: v7x
topology: tpu7x:2x2x1
jax: 0.10.0
libtpu: 0.0.40
codegen_flags: <defaults>
</compile_context>

<pallas_src>
import functools

import jax
import jax.numpy as jnp
from jax.experimental import pallas as pl
from jax.experimental.pallas import tpu as pltpu

_LANE = 128
_SUBLANE = 8


def _round_up(x, m):
    return (x + m - 1) // m * m


def _sigmoid(x):
    # One EUP transcendental (tanh) instead of exp + reciprocal.
    return 0.5 * (jnp.tanh(0.5 * x) + 1.0)


def _lstm_kernel(x_ref, wih_ref, whh_ref, bias_ref, h0_ref, c0_ref,
                 out_ref, hN_ref, cN_ref, h_scr, c_scr,
                 *, h_pad, t_chunk, seq_len, need_mask):
    """Fused LSTM chunk: input projection + recurrence, all in VMEM.

    x_ref   : (b_tile, t_chunk, I)    input slab for this (batch, time) tile
    wih_ref : (I, 4*Hp)               input weights, resident (gate-padded)
    whh_ref : (Hp, 4*Hp)              recurrent weights, resident
    bias_ref: (1, 4*Hp)               b_ih + b_hh (gate-padded)
    h0/c0   : (b_tile, Hp)            initial state for this batch tile
    out_ref : (b_tile, t_chunk, Hp)   hidden states, batch-major (no wrapper
                                      transpose needed afterwards)
    hN/cN   : (b_tile, Hp)            final state
    h/c scr : (b_tile, Hp) f32        recurrent carry, persists across chunks
    """
    tc = pl.program_id(1)
    Hp = h_pad

    @pl.when(tc == 0)
    def _init():
        h_scr[...] = h0_ref[...].astype(h_scr.dtype)
        c_scr[...] = c0_ref[...].astype(c_scr.dtype)

    # Resident weights / bias.  (For very large H on v7x these could be
    # single-buffered — default BlockSpec double-buffering is acceptable here.)
    wih = wih_ref[...]
    whh = whh_ref[...]
    bias = bias_ref[...]                      # (1, 4*Hp), broadcasts over rows

    h = h_scr[...]
    c = c_scr[...]
    base = tc * t_chunk                       # hoisted out of the step loop

    # Statically unrolled time loop (t_chunk is small).  The x @ W_ih matmul
    # for step k is independent of the recurrence, so the scheduler can
    # overlap it with the previous step's gate math / EUP work.
    for k in range(t_chunk):
        x_k = x_ref[:, k, :]                                   # (b_tile, I)
        gates = (jnp.dot(x_k.astype(wih.dtype), wih,
                         preferred_element_type=jnp.float32)
                 + jnp.dot(h.astype(whh.dtype), whh,
                           preferred_element_type=jnp.float32)
                 + bias)                                        # (b_tile, 4Hp)

        # Each gate occupies a full lane-aligned block of Hp columns.
        i_g = _sigmoid(gates[:, 0 * Hp:1 * Hp])
        f_g = _sigmoid(gates[:, 1 * Hp:2 * Hp])
        g_g = jnp.tanh(gates[:, 2 * Hp:3 * Hp])
        o_g = _sigmoid(gates[:, 3 * Hp:4 * Hp])

        c_new = f_g * c + i_g * g_g
        h_new = o_g * jnp.tanh(c_new)

        # Batch-major, lane-dense (Hp on lanes) store; only sublane-masked.
        out_ref[:, k, :] = h_new.astype(out_ref.dtype)

        if need_mask:  # only traced when S was padded up to a chunk multiple
            keep = (base + k) < seq_len
            h_new = jnp.where(keep, h_new, h)
            c_new = jnp.where(keep, c_new, c)
        h, c = h_new, c_new

    h_scr[...] = h
    c_scr[...] = c
    # The constant-index hN/cN blocks are revisited over the time axis; write
    # them every chunk so the block is never left uninitialized — the value
    # flushed to HBM is the one from the final chunk.
    hN_ref[...] = h.astype(hN_ref.dtype)
    cN_ref[...] = c.astype(cN_ref.dtype)


def vanilla_lstm_forward(inputs, w_ih, w_hh, b_ih, b_hh, hx=None, *,
                         compute_dtype=jnp.float32, out_dtype=None,
                         t_chunk=None, b_tile=None,
                         vmem_budget_bytes=48 * 1024 * 1024):
    """inputs: (B, S, I).  Returns (outputs (B, S, H), (h_n, c_n)).

    compute_dtype : dtype of the MXU matmul operands (weights / h / x feed).
                    Use jnp.bfloat16 on real v5e/v6e/v7x hardware for the MXU
                    fast path; gate math and c/h accumulation stay float32.
                    Default float32 (portable / interpreter-safe).
    out_dtype     : storage dtype of the per-step hidden outputs (defaults to
                    inputs.dtype; bf16 halves output writeback bandwidth).
    hx            : optional (h0, c0) each (B, H); None -> zeros (like the
                    PyTorch module's default).
    """
    B, S, I = inputs.shape
    H = w_hh.shape[1]
    assert w_ih.shape == (4 * H, I) and w_hh.shape == (4 * H, H)
    assert b_ih.shape == (4 * H,) and b_hh.shape == (4 * H,)

    if out_dtype is None:
        out_dtype = inputs.dtype

    Hp = _round_up(H, _LANE)                   # lane-aligned per-gate width

    # ---- tile selection under an explicit VMEM budget ----------------------
    x_b = jnp.dtype(inputs.dtype).itemsize
    o_b = jnp.dtype(out_dtype).itemsize
    w_b = jnp.dtype(compute_dtype).itemsize

    def vmem_estimate(bt, tch):
        est = 2 * bt * tch * I * x_b                         # x tile (x2 buf)
        est += 2 * bt * tch * Hp * o_b                       # out tile (x2 buf)
        est += 2 * (I * 4 * Hp + Hp * 4 * Hp) * w_b          # resident weights
        est += 2 * 4 * Hp * 4                                # bias
        est += 8 * bt * Hp * 4                               # h0/c0/hN/cN bufs
        est += 2 * bt * Hp * 4                               # h/c scratch
        est += 4 * bt * 4 * Hp * 4                           # gate temporaries
        return est

    if b_tile is None:
        # 128 is MXU-friendly everywhere; 256 can help v6e/v7x for large H.
        b_tile = min(_round_up(B, _SUBLANE), 128)
    b_tile = _round_up(b_tile, _SUBLANE)
    if t_chunk is None:
        t_chunk = 16
    t_chunk = _round_up(max(1, min(t_chunk, S)), _SUBLANE)

    while vmem_estimate(b_tile, t_chunk) > vmem_budget_bytes and t_chunk > _SUBLANE:
        t_chunk = max(_SUBLANE, _round_up(t_chunk // 2, _SUBLANE))
    while vmem_estimate(b_tile, t_chunk) > vmem_budget_bytes and b_tile > _SUBLANE:
        b_tile = max(_SUBLANE, _round_up(b_tile // 2, _SUBLANE))

    Bp = _round_up(B, b_tile)
    Sp = _round_up(S, t_chunk)
    nb = Bp // b_tile
    nt = Sp // t_chunk
    need_mask = (Sp != S)

    # ---- gate-padded weight / bias layout ----------------------------------
    # Gate g lives in columns [g*Hp, g*Hp + H); padded rows/columns are zero so
    # padded h/c lanes never leak into real ones (W_hh rows >= H are zero).
    wih_pad = jnp.zeros((I, 4 * Hp), compute_dtype)
    whh_pad = jnp.zeros((Hp, 4 * Hp), compute_dtype)
    b_pad = jnp.zeros((1, 4 * Hp), jnp.float32)
    bias = (b_ih + b_hh).astype(jnp.float32)
    for g in range(4):
        wih_pad = wih_pad.at[:, g * Hp:g * Hp + H].set(
            w_ih[g * H:(g + 1) * H, :].T.astype(compute_dtype))
        whh_pad = whh_pad.at[:H, g * Hp:g * Hp + H].set(
            w_hh[g * H:(g + 1) * H, :].T.astype(compute_dtype))
        b_pad = b_pad.at[0, g * Hp:g * Hp + H].set(bias[g * H:(g + 1) * H])

    # Pad only the NARROW x tensor (cheap), never a 4*Hp-wide intermediate.
    x_pad = inputs
    if (Bp, Sp) != (B, S):
        x_pad = jnp.pad(inputs, ((0, Bp - B), (0, Sp - S), (0, 0)))

    # Initial state (module default hx=None -> zeros).
    if hx is None:
        h0 = jnp.zeros((Bp, Hp), jnp.float32)
        c0 = jnp.zeros((Bp, Hp), jnp.float32)
    else:
        h0_in, c0_in = hx
        h0 = jnp.zeros((Bp, Hp), jnp.float32).at[:B, :H].set(
            h0_in.astype(jnp.float32))
        c0 = jnp.zeros((Bp, Hp), jnp.float32).at[:B, :H].set(
            c0_in.astype(jnp.float32))

    kernel = functools.partial(_lstm_kernel, h_pad=Hp, t_chunk=t_chunk,
                               seq_len=S, need_mask=need_mask)

    est = vmem_estimate(b_tile, t_chunk)
    vmem_limit = int(min(max(2 * est, 32 * 1024 * 1024), 60 * 1024 * 1024))

    cost = pl.CostEstimate(
        flops=int(2 * Bp * Sp * (I + Hp) * 4 * Hp),
        transcendentals=int(5 * Bp * Sp * Hp),
        bytes_accessed=int(Bp * Sp * I * x_b + Bp * Sp * Hp * o_b
                           + (I + Hp) * 4 * Hp * w_b),
    )

    outs, h_n, c_n = pl.pallas_call(
        kernel,
        grid=(nb, nt),   # (batch tiles: parallel, time chunks: sequential)
        in_specs=[
            # narrow x slab for this (batch tile, time chunk)
            pl.BlockSpec((b_tile, t_chunk, I), lambda b, t: (b, t, 0)),
            # resident weights / bias (constant block index)
            pl.BlockSpec((I, 4 * Hp), lambda b, t: (0, 0)),
            pl.BlockSpec((Hp, 4 * Hp), lambda b, t: (0, 0)),
            pl.BlockSpec((1, 4 * Hp), lambda b, t: (0, 0)),
            # initial state for this batch tile
            pl.BlockSpec((b_tile, Hp), lambda b, t: (b, 0)),
            pl.BlockSpec((b_tile, Hp), lambda b, t: (b, 0)),
        ],
        out_specs=[
            # batch-major hidden states -> no wrapper transpose
            pl.BlockSpec((b_tile, t_chunk, Hp), lambda b, t: (b, t, 0)),
            pl.BlockSpec((b_tile, Hp), lambda b, t: (b, 0)),
            pl.BlockSpec((b_tile, Hp), lambda b, t: (b, 0)),
        ],
        out_shape=[
            jax.ShapeDtypeStruct((Bp, Sp, Hp), out_dtype),
            jax.ShapeDtypeStruct((Bp, Hp), jnp.float32),
            jax.ShapeDtypeStruct((Bp, Hp), jnp.float32),
        ],
        scratch_shapes=[
            pltpu.VMEM((b_tile, Hp), jnp.float32),   # h carry (per batch tile)
            pltpu.VMEM((b_tile, Hp), jnp.float32),   # c carry
        ],
        compiler_params=pltpu.CompilerParams(
            dimension_semantics=("parallel", "arbitrary"),
            vmem_limit_bytes=vmem_limit),
        cost_estimate=cost,
    )(x_pad, wih_pad, whh_pad, b_pad, h0, c0)

    outputs = outs[:B, :S, :H]                    # already (B, S, H)
    return outputs, (h_n[:B, :H], c_n[:B, :H])


def _reference_lstm(inputs, w_ih, w_hh, b_ih, b_hh, hx=None):
    """Pure-JAX reference (mirrors torch.nn.LSTMCell unrolled loop)."""
    B, S, I = inputs.shape
    H = w_hh.shape[1]
    if hx is None:
        hx = (jnp.zeros((B, H), jnp.float32), jnp.zeros((B, H), jnp.float32))

    def step(carry, x_t):
        h, c = carry
        gates = x_t @ w_ih.T + h @ w_hh.T + b_ih + b_hh
        i_g = jax.nn.sigmoid(gates[:, 0 * H:1 * H])
        f_g = jax.nn.sigmoid(gates[:, 1 * H:2 * H])
        g_g = jnp.tanh(gates[:, 2 * H:3 * H])
        o_g = jax.nn.sigmoid(gates[:, 3 * H:4 * H])
        c_new = f_g * c + i_g * g_g
        h_new = o_g * jnp.tanh(c_new)
        return (h_new, c_new), h_new

    (h_n, c_n), ys = jax.lax.scan(step, hx, jnp.transpose(inputs, (1, 0, 2)))
    return jnp.transpose(ys, (1, 0, 2)), (h_n, c_n)


if __name__ == "__main__":
    # Small shapes consistent with the module: inputs (B, S, input_size).
    B, S, I, H = 2, 8, 16, 32

    key = jax.random.PRNGKey(0)
    k_x, k_wi, k_wh, k_bi, k_bh, k_x2, k_h0, k_c0 = jax.random.split(key, 8)

    # Deterministic init, torch.nn.LSTMCell-style: U(-1/sqrt(H), 1/sqrt(H)).
    bound = 1.0 / (H ** 0.5)
    x = jax.random.normal(k_x, (B, S, I), jnp.float32)
    w_ih = jax.random.uniform(k_wi, (4 * H, I), jnp.float32, -bound, bound)
    w_hh = jax.random.uniform(k_wh, (4 * H, H), jnp.float32, -bound, bound)
    b_ih = jax.random.uniform(k_bi, (4 * H,), jnp.float32, -bound, bound)
    b_hh = jax.random.uniform(k_bh, (4 * H,), jnp.float32, -bound, bound)

    # --- default path: hx=None (zeros), f32 compute -------------------------
    outputs, (h_n, c_n) = vanilla_lstm_forward(x, w_ih, w_hh, b_ih, b_hh)
    jax.block_until_ready((outputs, h_n, c_n))

    ref_out, (ref_h, ref_c) = _reference_lstm(x, w_ih, w_hh, b_ih, b_hh)
    assert outputs.shape == (B, S, H)
    assert h_n.shape == (B, H) and c_n.shape == (B, H)
    assert jnp.allclose(outputs, ref_out, atol=1e-4, rtol=1e-4)
    assert jnp.allclose(h_n, ref_h, atol=1e-4, rtol=1e-4)
    assert jnp.allclose(c_n, ref_c, atol=1e-4, rtol=1e-4)

    # --- user-supplied hx + ragged shapes (exercises batch/seq padding +
    #     the last-chunk masking path) ---------------------------------------
    B2, S2 = 3, 5
    x2 = jax.random.normal(k_x2, (B2, S2, I), jnp.float32)
    h0 = 0.1 * jax.random.normal(k_h0, (B2, H), jnp.float32)
    c0 = 0.1 * jax.random.normal(k_c0, (B2, H), jnp.float32)

    out2, (h2, c2) = vanilla_lstm_forward(x2, w_ih, w_hh, b_ih, b_hh, (h0, c0))
    jax.block_until_ready((out2, h2, c2))

    ref_out2, (ref_h2, ref_c2) = _reference_lstm(x2, w_ih, w_hh, b_ih, b_hh,
                                                 (h0, c0))
    assert out2.shape == (B2, S2, H)
    assert jnp.allclose(out2, ref_out2, atol=1e-4, rtol=1e-4)
    assert jnp.allclose(h2, ref_h2, atol=1e-4, rtol=1e-4)
    assert jnp.allclose(c2, ref_c2, atol=1e-4, rtol=1e-4)

    print("KERNEL_OK")
</pallas_src>

<mosaic_0001>
module attributes {stable_mosaic.version = 11 : i64} {
  func.func @_lstm_kernel(%arg0: i32, %arg1: i32, %arg2: memref<8x8x16xf32, #tpu.memory_space<vmem>>, %arg3: memref<16x512xf32, #tpu.memory_space<vmem>>, %arg4: memref<128x512xf32, #tpu.memory_space<vmem>>, %arg5: memref<1x512xf32, #tpu.memory_space<vmem>>, %arg6: memref<8x128xf32, #tpu.memory_space<vmem>>, %arg7: memref<8x128xf32, #tpu.memory_space<vmem>>, %arg8: memref<8x8x128xf32, #tpu.memory_space<vmem>>, %arg9: memref<8x128xf32, #tpu.memory_space<vmem>>, %arg10: memref<8x128xf32, #tpu.memory_space<vmem>>, %arg11: memref<8x128xf32, #tpu.memory_space<vmem>>, %arg12: memref<8x128xf32, #tpu.memory_space<vmem>>) attributes {dimension_semantics = [#tpu.dimension_semantics<parallel>, #tpu.dimension_semantics<arbitrary>], iteration_bounds = array<i64: 1, 1>, scalar_prefetch = 0 : i64, scratch_operands = 2 : i64, tpu.core_type = #tpu.core_type<tc>, window_params = [{transform_indices = @transform_0, window_bounds = array<i64: 8, 8, 16>}, {pipeline_mode = #tpu.pipeline_mode<synchronous>, transform_indices = @transform_1, window_bounds = array<i64: 16, 512>}, {pipeline_mode = #tpu.pipeline_mode<synchronous>, transform_indices = @transform_2, window_bounds = array<i64: 128, 512>}, {pipeline_mode = #tpu.pipeline_mode<synchronous>, transform_indices = @transform_3, window_bounds = array<i64: 1, 512>}, {transform_indices = @transform_4, window_bounds = array<i64: 8, 128>}, {transform_indices = @transform_5, window_bounds = array<i64: 8, 128>}, {transform_indices = @transform_6, window_bounds = array<i64: 8, 8, 128>}, {transform_indices = @transform_7, window_bounds = array<i64: 8, 128>}, {transform_indices = @transform_8, window_bounds = array<i64: 8, 128>}]} {
    %c0_i32 = arith.constant 0 : i32
    %0 = arith.cmpi eq, %arg1, %c0_i32 : i32
    %1 = arith.extui %0 : i1 to i32
    %c0_i32_0 = arith.constant 0 : i32
    %2 = arith.cmpi ne, %1, %c0_i32_0 : i32
    scf.if %2 {
      %c0_146 = arith.constant 0 : index
      %c0_147 = arith.constant 0 : index
      %340 = vector.load %arg6[%c0_146, %c0_147] : memref<8x128xf32, #tpu.memory_space<vmem>>, vector<8x128xf32>
      %c0_148 = arith.constant 0 : index
      %c0_149 = arith.constant 0 : index
      %341 = vector.load %arg11[%c0_148, %c0_149] : memref<8x128xf32, #tpu.memory_space<vmem>>, vector<8x128xf32>
      tpu.vector_store %arg11[%c0_148, %c0_149], %340 {strides = array<i32>} : memref<8x128xf32, #tpu.memory_space<vmem>>, vector<8x128xf32>,
      %c0_150 = arith.constant 0 : index
      %c0_151 = arith.constant 0 : index
      %342 = vector.load %arg7[%c0_150, %c0_151] : memref<8x128xf32, #tpu.memory_space<vmem>>, vector<8x128xf32>
      %c0_152 = arith.constant 0 : index
      %c0_153 = arith.constant 0 : index
      %343 = vector.load %arg12[%c0_152, %c0_153] : memref<8x128xf32, #tpu.memory_space<vmem>>, vector<8x128xf32>
      tpu.vector_store %arg12[%c0_152, %c0_153], %342 {strides = array<i32>} : memref<8x128xf32, #tpu.memory_space<vmem>>, vector<8x128xf32>,
    } else {
    }
    %c0 = arith.constant 0 : index
    %c0_1 = arith.constant 0 : index
    %3 = vector.load %arg3[%c0, %c0_1] : memref<16x512xf32, #tpu.memory_space<vmem>>, vector<16x512xf32>
    %c0_2 = arith.constant 0 : index
    %c0_3 = arith.constant 0 : index
    %4 = vector.load %arg4[%c0_2, %c0_3] : memref<128x512xf32, #tpu.memory_space<vmem>>, vector<128x512xf32>
    %c0_4 = arith.constant 0 : index
    %c0_5 = arith.constant 0 : index
    %5 = vector.load %arg5[%c0_4, %c0_5] : memref<1x512xf32, #tpu.memory_space<vmem>>, vector<1x512xf32>
    %c0_6 = arith.constant 0 : index
    %c0_7 = arith.constant 0 : index
    %6 = vector.load %arg11[%c0_6, %c0_7] : memref<8x128xf32, #tpu.memory_space<vmem>>, vector<8x128xf32>
    %c0_8 = arith.constant 0 : index
    %c0_9 = arith.constant 0 : index
    %7 = vector.load %arg12[%c0_8, %c0_9] : memref<8x128xf32, #tpu.memory_space<vmem>>, vector<8x128xf32>
    %c0_10 = arith.constant 0 : index
    %c0_11 = arith.constant 0 : index
    %c0_12 = arith.constant 0 : index
    %8 = vector.load %arg2[%c0_10, %c0_11, %c0_12] : memref<8x8x16xf32, #tpu.memory_space<vmem>>, vector<8x1x16xf32>
    %9 = vector.shape_cast %8 : vector<8x1x16xf32> to vector<8x16xf32>
    %cst = arith.constant dense<0.000000e+00> : vector<8x512xf32>
    %10 = tpu.matmul %9, %3, %cst {dimension_numbers = #tpu.dot_dimension_numbers<[1], [0], [0], [1], [0, 0, 1, 1], [], []>} : vector<8x16xf32>, vector<16x512xf32>, vector<8x512xf32> -> vector<8x512xf32>
    %cst_13 = arith.constant dense<0.000000e+00> : vector<8x512xf32>
    %11 = tpu.matmul %6, %4, %cst_13 {dimension_numbers = #tpu.dot_dimension_numbers<[1], [0], [0], [1], [0, 0, 1, 1], [], []>} : vector<8x128xf32>, vector<128x512xf32>, vector<8x512xf32> -> vector<8x512xf32>
    %12 = arith.addf %10, %11 : vector<8x512xf32>
    %13 = vector.broadcast %5 : vector<1x512xf32> to vector<8x512xf32>
    %14 = arith.addf %12, %13 : vector<8x512xf32>
    %15 = vector.extract_strided_slice %14 {offsets = [0, 0], sizes = [8, 128], strides = [1, 1]} : vector<8x512xf32> to vector<8x128xf32>
    %cst_14 = arith.constant 5.000000e-01 : f32
    %16 = vector.broadcast %cst_14 : f32 to vector<8x128xf32>
    %17 = arith.mulf %16, %15 : vector<8x128xf32>
    %18 = math.tanh %17 : vector<8x128xf32>
    %cst_15 = arith.constant 1.000000e+00 : f32
    %19 = vector.broadcast %cst_15 : f32 to vector<8x128xf32>
    %20 = arith.addf %18, %19 : vector<8x128xf32>
    %cst_16 = arith.constant 5.000000e-01 : f32
    %21 = vector.broadcast %cst_16 : f32 to vector<8x128xf32>
    %22 = arith.mulf %21, %20 : vector<8x128xf32>
    %23 = vector.extract_strided_slice %14 {offsets = [0, 128], sizes = [8, 128], strides = [1, 1]} : vector<8x512xf32> to vector<8x128xf32>
    %cst_17 = arith.constant 5.000000e-01 : f32
    %24 = vector.broadcast %cst_17 : f32 to vector<8x128xf32>
    %25 = arith.mulf %24, %23 : vector<8x128xf32>
    %26 = math.tanh %25 : vector<8x128xf32>
    %cst_18 = arith.constant 1.000000e+00 : f32
    %27 = vector.broadcast %cst_18 : f32 to vector<8x128xf32>
    %28 = arith.addf %26, %27 : vector<8x128xf32>
    %cst_19 = arith.constant 5.000000e-01 : f32
    %29 = vector.broadcast %cst_19 : f32 to vector<8x128xf32>
    %30 = arith.mulf %29, %28 : vector<8x128xf32>
    %31 = vector.extract_strided_slice %14 {offsets = [0, 256], sizes = [8, 128], strides = [1, 1]} : vector<8x512xf32> to vector<8x128xf32>
    %32 = math.tanh %31 : vector<8x128xf32>
    %33 = vector.extract_strided_slice %14 {offsets = [0, 384], sizes = [8, 128], strides = [1, 1]} : vector<8x512xf32> to vector<8x128xf32>
    %cst_20 = arith.constant 5.000000e-01 : f32
    %34 = vector.broadcast %cst_20 : f32 to vector<8x128xf32>
    %35 = arith.mulf %34, %33 : vector<8x128xf32>
    %36 = math.tanh %35 : vector<8x128xf32>
    %cst_21 = arith.constant 1.000000e+00 : f32
    %37 = vector.broadcast %cst_21 : f32 to vector<8x128xf32>
    %38 = arith.addf %36, %37 : vector<8x128xf32>
    %cst_22 = arith.constant 5.000000e-01 : f32
    %39 = vector.broadcast %cst_22 : f32 to vector<8x128xf32>
    %40 = arith.mulf %39, %38 : vector<8x128xf32>
    %41 = arith.mulf %30, %7 : vector<8x128xf32>
    %42 = arith.mulf %22, %32 : vector<8x128xf32>
    %43 = arith.addf %41, %42 : vector<8x128xf32>
    %44 = math.tanh %43 : vector<8x128xf32>
    %45 = arith.mulf %40, %44 : vector<8x128xf32>
    %c0_23 = arith.constant 0 : index
    %c0_24 = arith.constant 0 : index
    %c0_25 = arith.constant 0 : index
    %46 = vector.load %arg8[%c0_23, %c0_24, %c0_25] : memref<8x8x128xf32, #tpu.memory_space<vmem>>, vector<8x1x128xf32>
    %47 = vector.shape_cast %46 : vector<8x1x128xf32> to vector<8x128xf32>
    %48 = vector.shape_cast %45 : vector<8x128xf32> to vector<8x1x128xf32>
    tpu.vector_store %arg8[%c0_23, %c0_24, %c0_25], %48 {strides = array<i32>} : memref<8x8x128xf32, #tpu.memory_space<vmem>>, vector<8x1x128xf32>,
    %c0_26 = arith.constant 0 : index
    %c1 = arith.constant 1 : index
    %c0_27 = arith.constant 0 : index
    %49 = vector.load %arg2[%c0_26, %c1, %c0_27] : memref<8x8x16xf32, #tpu.memory_space<vmem>>, vector<8x1x16xf32>
    %50 = vector.shape_cast %49 : vector<8x1x16xf32> to vector<8x16xf32>
    %cst_28 = arith.constant dense<0.000000e+00> : vector<8x512xf32>
    %51 = tpu.matmul %50, %3, %cst_28 {dimension_numbers = #tpu.dot_dimension_numbers<[1], [0], [0], [1], [0, 0, 1, 1], [], []>} : vector<8x16xf32>, vector<16x512xf32>, vector<8x512xf32> -> vector<8x512xf32>
    %cst_29 = arith.constant dense<0.000000e+00> : vector<8x512xf32>
    %52 = tpu.matmul %45, %4, %cst_29 {dimension_numbers = #tpu.dot_dimension_numbers<[1], [0], [0], [1], [0, 0, 1, 1], [], []>} : vector<8x128xf32>, vector<128x512xf32>, vector<8x512xf32> -> vector<8x512xf32>
    %53 = arith.addf %51, %52 : vector<8x512xf32>
    %54 = vector.broadcast %5 : vector<1x512xf32> to vector<8x512xf32>
    %55 = arith.addf %53, %54 : vector<8x512xf32>
    %56 = vector.extract_strided_slice %55 {offsets = [0, 0], sizes = [8, 128], strides = [1, 1]} : vector<8x512xf32> to vector<8x128xf32>
    %cst_30 = arith.constant 5.000000e-01 : f32
    %57 = vector.broadcast %cst_30 : f32 to vector<8x128xf32>
    %58 = arith.mulf %57, %56 : vector<8x128xf32>
    %59 = math.tanh %58 : vector<8x128xf32>
    %cst_31 = arith.constant 1.000000e+00 : f32
    %60 = vector.broadcast %cst_31 : f32 to vector<8x128xf32>
    %61 = arith.addf %59, %60 : vector<8x128xf32>
    %cst_32 = arith.constant 5.000000e-01 : f32
    %62 = vector.broadcast %cst_32 : f32 to vector<8x128xf32>
    %63 = arith.mulf %62, %61 : vector<8x128xf32>
    %64 = vector.extract_strided_slice %55 {offsets = [0, 128], sizes = [8, 128], strides = [1, 1]} : vector<8x512xf32> to vector<8x128xf32>
    %cst_33 = arith.constant 5.000000e-01 : f32
    %65 = vector.broadcast %cst_33 : f32 to vector<8x128xf32>
    %66 = arith.mulf %65, %64 : vector<8x128xf32>
    %67 = math.tanh %66 : vector<8x128xf32>
    %cst_34 = arith.constant 1.000000e+00 : f32
    %68 = vector.broadcast %cst_34 : f32 to vector<8x128xf32>
    %69 = arith.addf %67, %68 : vector<8x128xf32>
    %cst_35 = arith.constant 5.000000e-01 : f32
    %70 = vector.broadcast %cst_35 : f32 to vector<8x128xf32>
    %71 = arith.mulf %70, %69 : vector<8x128xf32>
    %72 = vector.extract_strided_slice %55 {offsets = [0, 256], sizes = [8, 128], strides = [1, 1]} : vector<8x512xf32> to vector<8x128xf32>
    %73 = math.tanh %72 : vector<8x128xf32>
    %74 = vector.extract_strided_slice %55 {offsets = [0, 384], sizes = [8, 128], strides = [1, 1]} : vector<8x512xf32> to vector<8x128xf32>
    %cst_36 = arith.constant 5.000000e-01 : f32
    %75 = vector.broadcast %cst_36 : f32 to vector<8x128xf32>
    %76 = arith.mulf %75, %74 : vector<8x128xf32>
    %77 = math.tanh %76 : vector<8x128xf32>
    %cst_37 = arith.constant 1.000000e+00 : f32
    %78 = vector.broadcast %cst_37 : f32 to vector<8x128xf32>
    %79 = arith.addf %77, %78 : vector<8x128xf32>
    %cst_38 = arith.constant 5.000000e-01 : f32
    %80 = vector.broadcast %cst_38 : f32 to vector<8x128xf32>
    %81 = arith.mulf %80, %79 : vector<8x128xf32>
    %82 = arith.mulf %71, %43 : vector<8x128xf32>
    %83 = arith.mulf %63, %73 : vector<8x128xf32>
    %84 = arith.addf %82, %83 : vector<8x128xf32>
    %85 = math.tanh %84 : vector<8x128xf32>
    %86 = arith.mulf %81, %85 : vector<8x128xf32>
    %c0_39 = arith.constant 0 : index
    %c1_40 = arith.constant 1 : index
    %c0_41 = arith.constant 0 : index
    %87 = vector.load %arg8[%c0_39, %c1_40, %c0_41] : memref<8x8x128xf32, #tpu.memory_space<vmem>>, vector<8x1x128xf32>
    %88 = vector.shape_cast %87 : vector<8x1x128xf32> to vector<8x128xf32>
    %89 = vector.shape_cast %86 : vector<8x128xf32> to vector<8x1x128xf32>
    tpu.vector_store %arg8[%c0_39, %c1_40, %c0_41], %89 {strides = array<i32>} : memref<8x8x128xf32, #tpu.memory_space<vmem>>, vector<8x1x128xf32>,
    %c0_42 = arith.constant 0 : index
    %c2 = arith.constant 2 : index
    %c0_43 = arith.constant 0 : index
    %90 = vector.load %arg2[%c0_42, %c2, %c0_43] : memref<8x8x16xf32, #tpu.memory_space<vmem>>, vector<8x1x16xf32>
    %91 = vector.shape_cast %90 : vector<8x1x16xf32> to vector<8x16xf32>
    %cst_44 = arith.constant dense<0.000000e+00> : vector<8x512xf32>
    %92 = tpu.matmul %91, %3, %cst_44 {dimension_numbers = #tpu.dot_dimension_numbers<[1], [0], [0], [1], [0, 0, 1, 1], [], []>} : vector<8x16xf32>, vector<16x512xf32>, vector<8x512xf32> -> vector<8x512xf32>
    %cst_45 = arith.constant dense<0.000000e+00> : vector<8x512xf32>
    %93 = tpu.matmul %86, %4, %cst_45 {dimension_numbers = #tpu.dot_dimension_numbers<[1], [0], [0], [1], [0, 0, 1, 1], [], []>} : vector<8x128xf32>, vector<128x512xf32>, vector<8x512xf32> -> vector<8x512xf32>
    %94 = arith.addf %92, %93 : vector<8x512xf32>
    %95 = vector.broadcast %5 : vector<1x512xf32> to vector<8x512xf32>
    %96 = arith.addf %94, %95 : vector<8x512xf32>
    %97 = vector.extract_strided_slice %96 {offsets = [0, 0], sizes = [8, 128], strides = [1, 1]} : vector<8x512xf32> to vector<8x128xf32>
    %cst_46 = arith.constant 5.000000e-01 : f32
    %98 = vector.broadcast %cst_46 : f32 to vector<8x128xf32>
    %99 = arith.mulf %98, %97 : vector<8x128xf32>
    %100 = math.tanh %99 : vector<8x128xf32>
    %cst_47 = arith.constant 1.000000e+00 : f32
    %101 = vector.broadcast %cst_47 : f32 to vector<8x128xf32>
    %102 = arith.addf %100, %101 : vector<8x128xf32>
    %cst_48 = arith.constant 5.000000e-01 : f32
    %103 = vector.broadcast %cst_48 : f32 to vector<8x128xf32>
    %104 = arith.mulf %103, %102 : vector<8x128xf32>
    %105 = vector.extract_strided_slice %96 {offsets = [0, 128], sizes = [8, 128], strides = [1, 1]} : vector<8x512xf32> to vector<8x128xf32>
    %cst_49 = arith.constant 5.000000e-01 : f32
    %106 = vector.broadcast %cst_49 : f32 to vector<8x128xf32>
    %107 = arith.mulf %106, %105 : vector<8x128xf32>
    %108 = math.tanh %107 : vector<8x128xf32>
    %cst_50 = arith.constant 1.000000e+00 : f32
    %109 = vector.broadcast %cst_50 : f32 to vector<8x128xf32>
    %110 = arith.addf %108, %109 : vector<8x128xf32>
    %cst_51 = arith.constant 5.000000e-01 : f32
    %111 = vector.broadcast %cst_51 : f32 to vector<8x128xf32>
    %112 = arith.mulf %111, %110 : vector<8x128xf32>
    %113 = vector.extract_strided_slice %96 {offsets = [0, 256], sizes = [8, 128], strides = [1, 1]} : vector<8x512xf32> to vector<8x128xf32>
    %114 = math.tanh %113 : vector<8x128xf32>
    %115 = vector.extract_strided_slice %96 {offsets = [0, 384], sizes = [8, 128], strides = [1, 1]} : vector<8x512xf32> to vector<8x128xf32>
    %cst_52 = arith.constant 5.000000e-01 : f32
    %116 = vector.broadcast %cst_52 : f32 to vector<8x128xf32>
    %117 = arith.mulf %116, %115 : vector<8x128xf32>
    %118 = math.tanh %117 : vector<8x128xf32>
    %cst_53 = arith.constant 1.000000e+00 : f32
    %119 = vector.broadcast %cst_53 : f32 to vector<8x128xf32>
    %120 = arith.addf %118, %119 : vector<8x128xf32>
    %cst_54 = arith.constant 5.000000e-01 : f32
    %121 = vector.broadcast %cst_54 : f32 to vector<8x128xf32>
    %122 = arith.mulf %121, %120 : vector<8x128xf32>
    %123 = arith.mulf %112, %84 : vector<8x128xf32>
    %124 = arith.mulf %104, %114 : vector<8x128xf32>
    %125 = arith.addf %123, %124 : vector<8x128xf32>
    %126 = math.tanh %125 : vector<8x128xf32>
    %127 = arith.mulf %122, %126 : vector<8x128xf32>
    %c0_55 = arith.constant 0 : index
    %c2_56 = arith.constant 2 : index
    %c0_57 = arith.constant 0 : index
    %128 = vector.load %arg8[%c0_55, %c2_56, %c0_57] : memref<8x8x128xf32, #tpu.memory_space<vmem>>, vector<8x1x128xf32>
    %129 = vector.shape_cast %128 : vector<8x1x128xf32> to vector<8x128xf32>
    %130 = vector.shape_cast %127 : vector<8x128xf32> to vector<8x1x128xf32>
    tpu.vector_store %arg8[%c0_55, %c2_56, %c0_57], %130 {strides = array<i32>} : memref<8x8x128xf32, #tpu.memory_space<vmem>>, vector<8x1x128xf32>,
    %c0_58 = arith.constant 0 : index
    %c3 = arith.constant 3 : index
    %c0_59 = arith.constant 0 : index
    %131 = vector.load %arg2[%c0_58, %c3, %c0_59] : memref<8x8x16xf32, #tpu.memory_space<vmem>>, vector<8x1x16xf32>
    %132 = vector.shape_cast %131 : vector<8x1x16xf32> to vector<8x16xf32>
    %cst_60 = arith.constant dense<0.000000e+00> : vector<8x512xf32>
    %133 = tpu.matmul %132, %3, %cst_60 {dimension_numbers = #tpu.dot_dimension_numbers<[1], [0], [0], [1], [0, 0, 1, 1], [], []>} : vector<8x16xf32>, vector<16x512xf32>, vector<8x512xf32> -> vector<8x512xf32>
    %cst_61 = arith.constant dense<0.000000e+00> : vector<8x512xf32>
    %134 = tpu.matmul %127, %4, %cst_61 {dimension_numbers = #tpu.dot_dimension_numbers<[1], [0], [0], [1], [0, 0, 1, 1], [], []>} : vector<8x128xf32>, vector<128x512xf32>, vector<8x512xf32> -> vector<8x512xf32>
    %135 = arith.addf %133, %134 : vector<8x512xf32>
    %136 = vector.broadcast %5 : vector<1x512xf32> to vector<8x512xf32>
    %137 = arith.addf %135, %136 : vector<8x512xf32>
    %138 = vector.extract_strided_slice %137 {offsets = [0, 0], sizes = [8, 128], strides = [1, 1]} : vector<8x512xf32> to vector<8x128xf32>
    %cst_62 = arith.constant 5.000000e-01 : f32
    %139 = vector.broadcast %cst_62 : f32 to vector<8x128xf32>
    %140 = arith.mulf %139, %138 : vector<8x128xf32>
    %141 = math.tanh %140 : vector<8x128xf32>
    %cst_63 = arith.constant 1.000000e+00 : f32
    %142 = vector.broadcast %cst_63 : f32 to vector<8x128xf32>
    %143 = arith.addf %141, %142 : vector<8x128xf32>
    %cst_64 = arith.constant 5.000000e-01 : f32
    %144 = vector.broadcast %cst_64 : f32 to vector<8x128xf32>
    %145 = arith.mulf %144, %143 : vector<8x128xf32>
    %146 = vector.extract_strided_slice %137 {offsets = [0, 128], sizes = [8, 128], strides = [1, 1]} : vector<8x512xf32> to vector<8x128xf32>
    %cst_65 = arith.constant 5.000000e-01 : f32
    %147 = vector.broadcast %cst_65 : f32 to vector<8x128xf32>
    %148 = arith.mulf %147, %146 : vector<8x128xf32>
    %149 = math.tanh %148 : vector<8x128xf32>
    %cst_66 = arith.constant 1.000000e+00 : f32
    %150 = vector.broadcast %cst_66 : f32 to vector<8x128xf32>
    %151 = arith.addf %149, %150 : vector<8x128xf32>
    %cst_67 = arith.constant 5.000000e-01 : f32
    %152 = vector.broadcast %cst_67 : f32 to vector<8x128xf32>
    %153 = arith.mulf %152, %151 : vector<8x128xf32>
    %154 = vector.extract_strided_slice %137 {offsets = [0, 256], sizes = [8, 128], strides = [1, 1]} : vector<8x512xf32> to vector<8x128xf32>
    %155 = math.tanh %154 : vector<8x128xf32>
    %156 = vector.extract_strided_slice %137 {offsets = [0, 384], sizes = [8, 128], strides = [1, 1]} : vector<8x512xf32> to vector<8x128xf32>
    %cst_68 = arith.constant 5.000000e-01 : f32
    %157 = vector.broadcast %cst_68 : f32 to vector<8x128xf32>
    %158 = arith.mulf %157, %156 : vector<8x128xf32>
    %159 = math.tanh %158 : vector<8x128xf32>
    %cst_69 = arith.constant 1.000000e+00 : f32
    %160 = vector.broadcast %cst_69 : f32 to vector<8x128xf32>
    %161 = arith.addf %159, %160 : vector<8x128xf32>
    %cst_70 = arith.constant 5.000000e-01 : f32
    %162 = vector.broadcast %cst_70 : f32 to vector<8x128xf32>
    %163 = arith.mulf %162, %161 : vector<8x128xf32>
    %164 = arith.mulf %153, %125 : vector<8x128xf32>
    %165 = arith.mulf %145, %155 : vector<8x128xf32>
    %166 = arith.addf %164, %165 : vector<8x128xf32>
    %167 = math.tanh %166 : vector<8x128xf32>
    %168 = arith.mulf %163, %167 : vector<8x128xf32>
    %c0_71 = arith.constant 0 : index
    %c3_72 = arith.constant 3 : index
    %c0_73 = arith.constant 0 : index
    %169 = vector.load %arg8[%c0_71, %c3_72, %c0_73] : memref<8x8x128xf32, #tpu.memory_space<vmem>>, vector<8x1x128xf32>
    %170 = vector.shape_cast %169 : vector<8x1x128xf32> to vector<8x128xf32>
    %171 = vector.shape_cast %168 : vector<8x128xf32> to vector<8x1x128xf32>
    tpu.vector_store %arg8[%c0_71, %c3_72, %c0_73], %171 {strides = array<i32>} : memref<8x8x128xf32, #tpu.memory_space<vmem>>, vector<8x1x128xf32>,
    %c0_74 = arith.constant 0 : index
    %c4 = arith.constant 4 : index
    %c0_75 = arith.constant 0 : index
    %172 = vector.load %arg2[%c0_74, %c4, %c0_75] : memref<8x8x16xf32, #tpu.memory_space<vmem>>, vector<8x1x16xf32>
    %173 = vector.shape_cast %172 : vector<8x1x16xf32> to vector<8x16xf32>
    %cst_76 = arith.constant dense<0.000000e+00> : vector<8x512xf32>
    %174 = tpu.matmul %173, %3, %cst_76 {dimension_numbers = #tpu.dot_dimension_numbers<[1], [0], [0], [1], [0, 0, 1, 1], [], []>} : vector<8x16xf32>, vector<16x512xf32>, vector<8x512xf32> -> vector<8x512xf32>
    %cst_77 = arith.constant dense<0.000000e+00> : vector<8x512xf32>
    %175 = tpu.matmul %168, %4, %cst_77 {dimension_numbers = #tpu.dot_dimension_numbers<[1], [0], [0], [1], [0, 0, 1, 1], [], []>} : vector<8x128xf32>, vector<128x512xf32>, vector<8x512xf32> -> vector<8x512xf32>
    %176 = arith.addf %174, %175 : vector<8x512xf32>
    %177 = vector.broadcast %5 : vector<1x512xf32> to vector<8x512xf32>
    %178 = arith.addf %176, %177 : vector<8x512xf32>
    %179 = vector.extract_strided_slice %178 {offsets = [0, 0], sizes = [8, 128], strides = [1, 1]} : vector<8x512xf32> to vector<8x128xf32>
    %cst_78 = arith.constant 5.000000e-01 : f32
    %180 = vector.broadcast %cst_78 : f32 to vector<8x128xf32>
    %181 = arith.mulf %180, %179 : vector<8x128xf32>
    %182 = math.tanh %181 : vector<8x128xf32>
    %cst_79 = arith.constant 1.000000e+00 : f32
    %183 = vector.broadcast %cst_79 : f32 to vector<8x128xf32>
    %184 = arith.addf %182, %183 : vector<8x128xf32>
    %cst_80 = arith.constant 5.000000e-01 : f32
    %185 = vector.broadcast %cst_80 : f32 to vector<8x128xf32>
    %186 = arith.mulf %185, %184 : vector<8x128xf32>
    %187 = vector.extract_strided_slice %178 {offsets = [0, 128], sizes = [8, 128], strides = [1, 1]} : vector<8x512xf32> to vector<8x128xf32>
    %cst_81 = arith.constant 5.000000e-01 : f32
    %188 = vector.broadcast %cst_81 : f32 to vector<8x128xf32>
    %189 = arith.mulf %188, %187 : vector<8x128xf32>
    %190 = math.tanh %189 : vector<8x128xf32>
    %cst_82 = arith.constant 1.000000e+00 : f32
    %191 = vector.broadcast %cst_82 : f32 to vector<8x128xf32>
    %192 = arith.addf %190, %191 : vector<8x128xf32>
    %cst_83 = arith.constant 5.000000e-01 : f32
    %193 = vector.broadcast %cst_83 : f32 to vector<8x128xf32>
    %194 = arith.mulf %193, %192 : vector<8x128xf32>
    %195 = vector.extract_strided_slice %178 {offsets = [0, 256], sizes = [8, 128], strides = [1, 1]} : vector<8x512xf32> to vector<8x128xf32>
    %196 = math.tanh %195 : vector<8x128xf32>
    %197 = vector.extract_strided_slice %178 {offsets = [0, 384], sizes = [8, 128], strides = [1, 1]} : vector<8x512xf32> to vector<8x128xf32>
    %cst_84 = arith.constant 5.000000e-01 : f32
    %198 = vector.broadcast %cst_84 : f32 to vector<8x128xf32>
    %199 = arith.mulf %198, %197 : vector<8x128xf32>
    %200 = math.tanh %199 : vector<8x128xf32>
    %cst_85 = arith.constant 1.000000e+00 : f32
    %201 = vector.broadcast %cst_85 : f32 to vector<8x128xf32>
    %202 = arith.addf %200, %201 : vector<8x128xf32>
    %cst_86 = arith.constant 5.000000e-01 : f32
    %203 = vector.broadcast %cst_86 : f32 to vector<8x128xf32>
    %204 = arith.mulf %203, %202 : vector<8x128xf32>
    %205 = arith.mulf %194, %166 : vector<8x128xf32>
    %206 = arith.mulf %186, %196 : vector<8x128xf32>
    %207 = arith.addf %205, %206 : vector<8x128xf32>
    %208 = math.tanh %207 : vector<8x128xf32>
    %209 = arith.mulf %204, %208 : vector<8x128xf32>
    %c0_87 = arith.constant 0 : index
    %c4_88 = arith.constant 4 : index
    %c0_89 = arith.constant 0 : index
    %210 = vector.load %arg8[%c0_87, %c4_88, %c0_89] : memref<8x8x128xf32, #tpu.memory_space<vmem>>, vector<8x1x128xf32>
    %211 = vector.shape_cast %210 : vector<8x1x128xf32> to vector<8x128xf32>
    %212 = vector.shape_cast %209 : vector<8x128xf32> to vector<8x1x128xf32>
    tpu.vector_store %arg8[%c0_87, %c4_88, %c0_89], %212 {strides = array<i32>} : memref<8x8x128xf32, #tpu.memory_space<vmem>>, vector<8x1x128xf32>,
    %c0_90 = arith.constant 0 : index
    %c5 = arith.constant 5 : index
    %c0_91 = arith.constant 0 : index
    %213 = vector.load %arg2[%c0_90, %c5, %c0_91] : memref<8x8x16xf32, #tpu.memory_space<vmem>>, vector<8x1x16xf32>
    %214 = vector.shape_cast %213 : vector<8x1x16xf32> to vector<8x16xf32>
    %cst_92 = arith.constant dense<0.000000e+00> : vector<8x512xf32>
    %215 = tpu.matmul %214, %3, %cst_92 {dimension_numbers = #tpu.dot_dimension_numbers<[1], [0], [0], [1], [0, 0, 1, 1], [], []>} : vector<8x16xf32>, vector<16x512xf32>, vector<8x512xf32> -> vector<8x512xf32>
    %cst_93 = arith.constant dense<0.000000e+00> : vector<8x512xf32>
    %216 = tpu.matmul %209, %4, %cst_93 {dimension_numbers = #tpu.dot_dimension_numbers<[1], [0], [0], [1], [0, 0, 1, 1], [], []>} : vector<8x128xf32>, vector<128x512xf32>, vector<8x512xf32> -> vector<8x512xf32>
    %217 = arith.addf %215, %216 : vector<8x512xf32>
    %218 = vector.broadcast %5 : vector<1x512xf32> to vector<8x512xf32>
    %219 = arith.addf %217, %218 : vector<8x512xf32>
    %220 = vector.extract_strided_slice %219 {offsets = [0, 0], sizes = [8, 128], strides = [1, 1]} : vector<8x512xf32> to vector<8x128xf32>
    %cst_94 = arith.constant 5.000000e-01 : f32
    %221 = vector.broadcast %cst_94 : f32 to vector<8x128xf32>
    %222 = arith.mulf %221, %220 : vector<8x128xf32>
    %223 = math.tanh %222 : vector<8x128xf32>
    %cst_95 = arith.constant 1.000000e+00 : f32
    %224 = vector.broadcast %cst_95 : f32 to vector<8x128xf32>
    %225 = arith.addf %223, %224 : vector<8x128xf32>
    %cst_96 = arith.constant 5.000000e-01 : f32
    %226 = vector.broadcast %cst_96 : f32 to vector<8x128xf32>
    %227 = arith.mulf %226, %225 : vector<8x128xf32>
    %228 = vector.extract_strided_slice %219 {offsets = [0, 128], sizes = [8, 128], strides = [1, 1]} : vector<8x512xf32> to vector<8x128xf32>
    %cst_97 = arith.constant 5.000000e-01 : f32
    %229 = vector.broadcast %cst_97 : f32 to vector<8x128xf32>
    %230 = arith.mulf %229, %228 : vector<8x128xf32>
    %231 = math.tanh %230 : vector<8x128xf32>
    %cst_98 = arith.constant 1.000000e+00 : f32
    %232 = vector.broadcast %cst_98 : f32 to vector<8x128xf32>
    %233 = arith.addf %231, %232 : vector<8x128xf32>
    %cst_99 = arith.constant 5.000000e-01 : f32
    %234 = vector.broadcast %cst_99 : f32 to vector<8x128xf32>
    %235 = arith.mulf %234, %233 : vector<8x128xf32>
    %236 = vector.extract_strided_slice %219 {offsets = [0, 256], sizes = [8, 128], strides = [1, 1]} : vector<8x512xf32> to vector<8x128xf32>
    %237 = math.tanh %236 : vector<8x128xf32>
    %238 = vector.extract_strided_slice %219 {offsets = [0, 384], sizes = [8, 128], strides = [1, 1]} : vector<8x512xf32> to vector<8x128xf32>
    %cst_100 = arith.constant 5.000000e-01 : f32
    %239 = vector.broadcast %cst_100 : f32 to vector<8x128xf32>
    %240 = arith.mulf %239, %238 : vector<8x128xf32>
    %241 = math.tanh %240 : vector<8x128xf32>
    %cst_101 = arith.constant 1.000000e+00 : f32
    %242 = vector.broadcast %cst_101 : f32 to vector<8x128xf32>
    %243 = arith.addf %241, %242 : vector<8x128xf32>
    %cst_102 = arith.constant 5.000000e-01 : f32
    %244 = vector.broadcast %cst_102 : f32 to vector<8x128xf32>
    %245 = arith.mulf %244, %243 : vector<8x128xf32>
    %246 = arith.mulf %235, %207 : vector<8x128xf32>
    %247 = arith.mulf %227, %237 : vector<8x128xf32>
    %248 = arith.addf %246, %247 : vector<8x128xf32>
    %249 = math.tanh %248 : vector<8x128xf32>
    %250 = arith.mulf %245, %249 : vector<8x128xf32>
    %c0_103 = arith.constant 0 : index
    %c5_104 = arith.constant 5 : index
    %c0_105 = arith.constant 0 : index
    %251 = vector.load %arg8[%c0_103, %c5_104, %c0_105] : memref<8x8x128xf32, #tpu.memory_space<vmem>>, vector<8x1x128xf32>
    %252 = vector.shape_cast %251 : vector<8x1x128xf32> to vector<8x128xf32>
    %253 = vector.shape_cast %250 : vector<8x128xf32> to vector<8x1x128xf32>
    tpu.vector_store %arg8[%c0_103, %c5_104, %c0_105], %253 {strides = array<i32>} : memref<8x8x128xf32, #tpu.memory_space<vmem>>, vector<8x1x128xf32>,
    %c0_106 = arith.constant 0 : index
    %c6 = arith.constant 6 : index
    %c0_107 = arith.constant 0 : index
    %254 = vector.load %arg2[%c0_106, %c6, %c0_107] : memref<8x8x16xf32, #tpu.memory_space<vmem>>, vector<8x1x16xf32>
    %255 = vector.shape_cast %254 : vector<8x1x16xf32> to vector<8x16xf32>
    %cst_108 = arith.constant dense<0.000000e+00> : vector<8x512xf32>
    %256 = tpu.matmul %255, %3, %cst_108 {dimension_numbers = #tpu.dot_dimension_numbers<[1], [0], [0], [1], [0, 0, 1, 1], [], []>} : vector<8x16xf32>, vector<16x512xf32>, vector<8x512xf32> -> vector<8x512xf32>
    %cst_109 = arith.constant dense<0.000000e+00> : vector<8x512xf32>
    %257 = tpu.matmul %250, %4, %cst_109 {dimension_numbers = #tpu.dot_dimension_numbers<[1], [0], [0], [1], [0, 0, 1, 1], [], []>} : vector<8x128xf32>, vector<128x512xf32>, vector<8x512xf32> -> vector<8x512xf32>
    %258 = arith.addf %256, %257 : vector<8x512xf32>
    %259 = vector.broadcast %5 : vector<1x512xf32> to vector<8x512xf32>
    %260 = arith.addf %258, %259 : vector<8x512xf32>
    %261 = vector.extract_strided_slice %260 {offsets = [0, 0], sizes = [8, 128], strides = [1, 1]} : vector<8x512xf32> to vector<8x128xf32>
    %cst_110 = arith.constant 5.000000e-01 : f32
    %262 = vector.broadcast %cst_110 : f32 to vector<8x128xf32>
    %263 = arith.mulf %262, %261 : vector<8x128xf32>
    %264 = math.tanh %263 : vector<8x128xf32>
    %cst_111 = arith.constant 1.000000e+00 : f32
    %265 = vector.broadcast %cst_111 : f32 to vector<8x128xf32>
    %266 = arith.addf %264, %265 : vector<8x128xf32>
    %cst_112 = arith.constant 5.000000e-01 : f32
    %267 = vector.broadcast %cst_112 : f32 to vector<8x128xf32>
    %268 = arith.mulf %267, %266 : vector<8x128xf32>
    %269 = vector.extract_strided_slice %260 {offsets = [0, 128], sizes = [8, 128], strides = [1, 1]} : vector<8x512xf32> to vector<8x128xf32>
    %cst_113 = arith.constant 5.000000e-01 : f32
    %270 = vector.broadcast %cst_113 : f32 to vector<8x128xf32>
    %271 = arith.mulf %270, %269 : vector<8x128xf32>
    %272 = math.tanh %271 : vector<8x128xf32>
    %cst_114 = arith.constant 1.000000e+00 : f32
    %273 = vector.broadcast %cst_114 : f32 to vector<8x128xf32>
    %274 = arith.addf %272, %273 : vector<8x128xf32>
    %cst_115 = arith.constant 5.000000e-01 : f32
    %275 = vector.broadcast %cst_115 : f32 to vector<8x128xf32>
    %276 = arith.mulf %275, %274 : vector<8x128xf32>
    %277 = vector.extract_strided_slice %260 {offsets = [0, 256], sizes = [8, 128], strides = [1, 1]} : vector<8x512xf32> to vector<8x128xf32>
    %278 = math.tanh %277 : vector<8x128xf32>
    %279 = vector.extract_strided_slice %260 {offsets = [0, 384], sizes = [8, 128], strides = [1, 1]} : vector<8x512xf32> to vector<8x128xf32>
    %cst_116 = arith.constant 5.000000e-01 : f32
    %280 = vector.broadcast %cst_116 : f32 to vector<8x128xf32>
    %281 = arith.mulf %280, %279 : vector<8x128xf32>
    %282 = math.tanh %281 : vector<8x128xf32>
    %cst_117 = arith.constant 1.000000e+00 : f32
    %283 = vector.broadcast %cst_117 : f32 to vector<8x128xf32>
    %284 = arith.addf %282, %283 : vector<8x128xf32>
    %cst_118 = arith.constant 5.000000e-01 : f32
    %285 = vector.broadcast %cst_118 : f32 to vector<8x128xf32>
    %286 = arith.mulf %285, %284 : vector<8x128xf32>
    %287 = arith.mulf %276, %248 : vector<8x128xf32>
    %288 = arith.mulf %268, %278 : vector<8x128xf32>
    %289 = arith.addf %287, %288 : vector<8x128xf32>
    %290 = math.tanh %289 : vector<8x128xf32>
    %291 = arith.mulf %286, %290 : vector<8x128xf32>
    %c0_119 = arith.constant 0 : index
    %c6_120 = arith.constant 6 : index
    %c0_121 = arith.constant 0 : index
    %292 = vector.load %arg8[%c0_119, %c6_120, %c0_121] : memref<8x8x128xf32, #tpu.memory_space<vmem>>, vector<8x1x128xf32>
    %293 = vector.shape_cast %292 : vector<8x1x128xf32> to vector<8x128xf32>
    %294 = vector.shape_cast %291 : vector<8x128xf32> to vector<8x1x128xf32>
    tpu.vector_store %arg8[%c0_119, %c6_120, %c0_121], %294 {strides = array<i32>} : memref<8x8x128xf32, #tpu.memory_space<vmem>>, vector<8x1x128xf32>,
    %c0_122 = arith.constant 0 : index
    %c7 = arith.constant 7 : index
    %c0_123 = arith.constant 0 : index
    %295 = vector.load %arg2[%c0_122, %c7, %c0_123] : memref<8x8x16xf32, #tpu.memory_space<vmem>>, vector<8x1x16xf32>
    %296 = vector.shape_cast %295 : vector<8x1x16xf32> to vector<8x16xf32>
    %cst_124 = arith.constant dense<0.000000e+00> : vector<8x512xf32>
    %297 = tpu.matmul %296, %3, %cst_124 {dimension_numbers = #tpu.dot_dimension_numbers<[1], [0], [0], [1], [0, 0, 1, 1], [], []>} : vector<8x16xf32>, vector<16x512xf32>, vector<8x512xf32> -> vector<8x512xf32>
    %cst_125 = arith.constant dense<0.000000e+00> : vector<8x512xf32>
    %298 = tpu.matmul %291, %4, %cst_125 {dimension_numbers = #tpu.dot_dimension_numbers<[1], [0], [0], [1], [0, 0, 1, 1], [], []>} : vector<8x128xf32>, vector<128x512xf32>, vector<8x512xf32> -> vector<8x512xf32>
    %299 = arith.addf %297, %298 : vector<8x512xf32>
    %300 = vector.broadcast %5 : vector<1x512xf32> to vector<8x512xf32>
    %301 = arith.addf %299, %300 : vector<8x512xf32>
    %302 = vector.extract_strided_slice %301 {offsets = [0, 0], sizes = [8, 128], strides = [1, 1]} : vector<8x512xf32> to vector<8x128xf32>
    %cst_126 = arith.constant 5.000000e-01 : f32
    %303 = vector.broadcast %cst_126 : f32 to vector<8x128xf32>
    %304 = arith.mulf %303, %302 : vector<8x128xf32>
    %305 = math.tanh %304 : vector<8x128xf32>
    %cst_127 = arith.constant 1.000000e+00 : f32
    %306 = vector.broadcast %cst_127 : f32 to vector<8x128xf32>
    %307 = arith.addf %305, %306 : vector<8x128xf32>
    %cst_128 = arith.constant 5.000000e-01 : f32
    %308 = vector.broadcast %cst_128 : f32 to vector<8x128xf32>
    %309 = arith.mulf %308, %307 : vector<8x128xf32>
    %310 = vector.extract_strided_slice %301 {offsets = [0, 128], sizes = [8, 128], strides = [1, 1]} : vector<8x512xf32> to vector<8x128xf32>
    %cst_129 = arith.constant 5.000000e-01 : f32
    %311 = vector.broadcast %cst_129 : f32 to vector<8x128xf32>
    %312 = arith.mulf %311, %310 : vector<8x128xf32>
    %313 = math.tanh %312 : vector<8x128xf32>
    %cst_130 = arith.constant 1.000000e+00 : f32
    %314 = vector.broadcast %cst_130 : f32 to vector<8x128xf32>
    %315 = arith.addf %313, %314 : vector<8x128xf32>
    %cst_131 = arith.constant 5.000000e-01 : f32
    %316 = vector.broadcast %cst_131 : f32 to vector<8x128xf32>
    %317 = arith.mulf %316, %315 : vector<8x128xf32>
    %318 = vector.extract_strided_slice %301 {offsets = [0, 256], sizes = [8, 128], strides = [1, 1]} : vector<8x512xf32> to vector<8x128xf32>
    %319 = math.tanh %318 : vector<8x128xf32>
    %320 = vector.extract_strided_slice %301 {offsets = [0, 384], sizes = [8, 128], strides = [1, 1]} : vector<8x512xf32> to vector<8x128xf32>
    %cst_132 = arith.constant 5.000000e-01 : f32
    %321 = vector.broadcast %cst_132 : f32 to vector<8x128xf32>
    %322 = arith.mulf %321, %320 : vector<8x128xf32>
    %323 = math.tanh %322 : vector<8x128xf32>
    %cst_133 = arith.constant 1.000000e+00 : f32
    %324 = vector.broadcast %cst_133 : f32 to vector<8x128xf32>
    %325 = arith.addf %323, %324 : vector<8x128xf32>
    %cst_134 = arith.constant 5.000000e-01 : f32
    %326 = vector.broadcast %cst_134 : f32 to vector<8x128xf32>
    %327 = arith.mulf %326, %325 : vector<8x128xf32>
    %328 = arith.mulf %317, %289 : vector<8x128xf32>
    %329 = arith.mulf %309, %319 : vector<8x128xf32>
    %330 = arith.addf %328, %329 : vector<8x128xf32>
    %331 = math.tanh %330 : vector<8x128xf32>
    %332 = arith.mulf %327, %331 : vector<8x128xf32>
    %c0_135 = arith.constant 0 : index
    %c7_136 = arith.constant 7 : index
    %c0_137 = arith.constant 0 : index
    %333 = vector.load %arg8[%c0_135, %c7_136, %c0_137] : memref<8x8x128xf32, #tpu.memory_space<vmem>>, vector<8x1x128xf32>
    %334 = vector.shape_cast %333 : vector<8x1x128xf32> to vector<8x128xf32>
    %335 = vector.shape_cast %332 : vector<8x128xf32> to vector<8x1x128xf32>
    tpu.vector_store %arg8[%c0_135, %c7_136, %c0_137], %335 {strides = array<i32>} : memref<8x8x128xf32, #tpu.memory_space<vmem>>, vector<8x1x128xf32>,
    %c0_138 = arith.constant 0 : index
    %c0_139 = arith.constant 0 : index
    %336 = vector.load %arg11[%c0_138, %c0_139] : memref<8x128xf32, #tpu.memory_space<vmem>>, vector<8x128xf32>
    tpu.vector_store %arg11[%c0_138, %c0_139], %332 {strides = array<i32>} : memref<8x128xf32, #tpu.memory_space<vmem>>, vector<8x128xf32>,
    %c0_140 = arith.constant 0 : index
    %c0_141 = arith.constant 0 : index
    %337 = vector.load %arg12[%c0_140, %c0_141] : memref<8x128xf32, #tpu.memory_space<vmem>>, vector<8x128xf32>
    tpu.vector_store %arg12[%c0_140, %c0_141], %330 {strides = array<i32>} : memref<8x128xf32, #tpu.memory_space<vmem>>, vector<8x128xf32>,
    %c0_142 = arith.constant 0 : index
    %c0_143 = arith.constant 0 : index
    %338 = vector.load %arg9[%c0_142, %c0_143] : memref<8x128xf32, #tpu.memory_space<vmem>>, vector<8x128xf32>
    tpu.vector_store %arg9[%c0_142, %c0_143], %332 {strides = array<i32>} : memref<8x128xf32, #tpu.memory_space<vmem>>, vector<8x128xf32>,
    %c0_144 = arith.constant 0 : index
    %c0_145 = arith.constant 0 : index
    %339 = vector.load %arg10[%c0_144, %c0_145] : memref<8x128xf32, #tpu.memory_space<vmem>>, vector<8x128xf32>
    tpu.vector_store %arg10[%c0_144, %c0_145], %330 {strides = array<i32>} : memref<8x128xf32, #tpu.memory_space<vmem>>, vector<8x128xf32>,
    return
  }
  func.func @transform_0(%arg0: i32, %arg1: i32) -> (i32, i32, i32) {
    %c0_i32 = arith.constant 0 : i32
    %c0_i32_0 = arith.constant 0 : i32
    return %arg0, %arg1, %c0_i32 : i32, i32, i32
  }
  func.func @transform_1(%arg0: i32, %arg1: i32) -> (i32, i32) {
    %c0_i32 = arith.constant 0 : i32
    %c0_i32_0 = arith.constant 0 : i32
    %c0_i32_1 = arith.constant 0 : i32
    return %c0_i32, %c0_i32_0 : i32, i32
  }
  func.func @transform_2(%arg0: i32, %arg1: i32) -> (i32, i32) {
    %c0_i32 = arith.constant 0 : i32
    %c0_i32_0 = arith.constant 0 : i32
    %c0_i32_1 = arith.constant 0 : i32
    return %c0_i32, %c0_i32_0 : i32, i32
  }
  func.func @transform_3(%arg0: i32, %arg1: i32) -> (i32, i32) {
    %c0_i32 = arith.constant 0 : i32
    %c0_i32_0 = arith.constant 0 : i32
    %c0_i32_1 = arith.constant 0 : i32
    return %c0_i32, %c0_i32_0 : i32, i32
  }
  func.func @transform_4(%arg0: i32, %arg1: i32) -> (i32, i32) {
    %c0_i32 = arith.constant 0 : i32
    %c0_i32_0 = arith.constant 0 : i32
    return %arg0, %c0_i32 : i32, i32
  }
  func.func @transform_5(%arg0: i32, %arg1: i32) -> (i32, i32) {
    %c0_i32 = arith.constant 0 : i32
    %c0_i32_0 = arith.constant 0 : i32
    return %arg0, %c0_i32 : i32, i32
  }
  func.func @transform_6(%arg0: i32, %arg1: i32) -> (i32, i32, i32) {
    %c0_i32 = arith.constant 0 : i32
    %c0_i32_0 = arith.constant 0 : i32
    return %arg0, %arg1, %c0_i32 : i32, i32, i32
  }
  func.func @transform_7(%arg0: i32, %arg1: i32) -> (i32, i32) {
    %c0_i32 = arith.constant 0 : i32
    %c0_i32_0 = arith.constant 0 : i32
    return %arg0, %c0_i32 : i32, i32
  }
  func.func @transform_8(%arg0: i32, %arg1: i32) -> (i32, i32) {
    %c0_i32 = arith.constant 0 : i32
    %c0_i32_0 = arith.constant 0 : i32
    return %arg0, %c0_i32 : i32, i32
  }
}

</mosaic_0001>

<bundles_post_ra>
// kernel: tpu_custom_call.1
= control target key start
LH: loop header
LB: loop body
LE: loop exit
PB: predicated region body
PF: predicated region fallthrough
CT: control target
= control target key end

     0   :  { %14 = vsyncpa [#allocation5], 0  ;;  %s5137_s0 = inlined_call_operand.hbm [shape: f32[8,8,16], index: 0, kind: input, shape index: {}]   ;;  %s5138_s1 = inlined_call_operand.hbm [shape: f32[16,512], index: 1, kind: input, shape index: {}]   ;;  %s5139_s2 = inlined_call_operand.hbm [shape: f32[128,512], index: 2, kind: input, shape index: {}]   ;;  %s5140_s3 = inlined_call_operand.hbm [shape: f32[1,512], index: 3, kind: input, shape index: {}]   ;;  %s5141_s4 = inlined_call_operand.vmem [shape: f32[8,128], index: 4, kind: input, shape index: {}]   ;;  %s5142_s5 = inlined_call_operand.vmem [shape: f32[8,128], index: 5, kind: input, shape index: {}]   ;;  %s5143_s6 = inlined_call_operand.hbm [shape: f32[8,8,128], index: 6, kind: output, shape index: {0}]   ;;  %s5144_s7 = inlined_call_operand.hbm [shape: f32[8,128], index: 7, kind: output, shape index: {1}]   ;;  %s5145_s8 = inlined_call_operand.hbm [shape: f32[8,128], index: 8, kind: output, shape index: {2}]  }
   0x1   :  { %15 = vsyncpa [#allocation8], 0 }
   0x2   :  { %16 = vsyncpa [#allocation11], 0 }
   0x3   :  { %17 = vsyncpa [#allocation6], 0 }
   0x4   :  { %18 = vsyncpa [#allocation14], 0  ;;  %s4388_s27 = smov [#allocation7]   ;;  %s4224_s9 = scalar_lea.hbm %s5138_s1, 1024 }
   0x5   :  { %s36_s28 = sshll.u32 %s4388_s27, 4  ;;  %p4225_p0 = scmp.ne.s32.totalorder %s5138_s1, %s4224_s9  ;;  %s37_s28 = int_to_ptr.vmem [resolvable:$true] %s36_s28 }
   0x6   :  { %p4228_p1 = scmp.lt.u32.totalorder %s4224_s9, %s5138_s1 }
   0x8   :  { %p4230_p2 = pnand %p4228_p1, %p4225_p0 }
   0xa   :  { %4233 = shalt.err (!%p4230_p2)
}
   0xb   :  { %s4234_s14 = scalar_lea.vmem %s37_s28, 1024  ;;  %p4239_p4 = scmp.lt.s32.totalorder %s37_s28, %s37_s28 }
   0xc   :  { %p4235_p3 = scmp.ne.s32.totalorder %s37_s28, %s4234_s14  ;;  %p4240_p5 = scmp.lt.s32.totalorder %s4234_s14, %s4234_s14 }
   0xe   :  { %p4241_p6 = por %p4240_p5, %p4239_p4 }
  0x10   :  { %p4242_p7 = pnand %p4241_p6, %p4235_p3 }
  0x12   :  { %4245 = shalt.err (!%p4242_p7)
}
  0x13   :  { %s4389_s15 = smov 512   ;;  %s4390_s16 = smov 32  }
  0x14   :  { %42 = dma.hbm_to_vmem [thread:$0]  %s5138_s1, 1024, %s37_s28, [#allocation8], %s4389_s15, %s4389_s15, %s4390_s16  }
  0x15   :  { %s4391_s19 = smov [#allocation4]   ;;  %s4246_s23 = scalar_lea.hbm %s5137_s0, 1024 }
  0x16   :  { %s24_s20 = sshll.u32 %s4391_s19, 4  ;;  %p4247_p8 = scmp.ne.s32.totalorder %s5137_s0, %s4246_s23  ;;  %s25_s20 = int_to_ptr.vmem [resolvable:$true] %s24_s20 }
  0x17   :  { %p4250_p9 = scmp.lt.u32.totalorder %s4246_s23, %s5137_s0 }
  0x19   :  { %p4252_p10 = pnand %p4250_p9, %p4247_p8 }
  0x1b   :  { %4255 = shalt.err (!%p4252_p10)
}
  0x1c   :  { %s4256_s29 = scalar_lea.vmem %s25_s20, 1024  ;;  %p4261_p12 = scmp.lt.s32.totalorder %s25_s20, %s25_s20 }
  0x1d   :  { %p4257_p11 = scmp.ne.s32.totalorder %s25_s20, %s4256_s29  ;;  %p4262_p13 = scmp.lt.s32.totalorder %s4256_s29, %s4256_s29 }
  0x1f   :  { %p4263_p0 = por %p4262_p13, %p4261_p12 }
  0x21   :  { %p4264_p1 = pnand %p4263_p0, %p4257_p11 }
  0x23   :  { %4267 = shalt.err (!%p4264_p1)
}
  0x24   :  { %s4392_s1 = smov 128   ;;  %s4393_s28 = smov 8  }
  0x25   :  { %30 = dma.hbm_to_vmem [thread:$0]  %s5137_s0, 1024, %s25_s20, [#allocation5], %s4392_s1, %s4392_s1, %s4393_s28  }
  0x26   :  { %s4394_s10 = smov [#allocation9]   ;;  %s4395_s12 = smov [#allocation10]  }
  0x27   :  { %s48_s11 = sshll.u32 %s4394_s10, 4  ;;  %s61_s13 = sshll.u32 %s4395_s12, 4  ;;  %s49_s11 = int_to_ptr.vmem [resolvable:$true] %s48_s11  ;;  %s62_s13 = int_to_ptr.vmem [resolvable:$true] %s61_s13 }
  0x28   :  { %s4268_s18 = scalar_lea.hbm %s5139_s2, 8192 }
  0x29   :  { %p4269_p2 = scmp.ne.s32.totalorder %s5139_s2, %s4268_s18  ;;  %p4272_p3 = scmp.lt.u32.totalorder %s4268_s18, %s5139_s2 }
  0x2b   :  { %p4274_p4 = pnand %p4272_p3, %p4269_p2 }
  0x2d   :  { %4277 = shalt.err (!%p4274_p4)
}
  0x2e   :  { %s4278_s0 = scalar_lea.vmem %s49_s11, 8192  ;;  %p4283_p6 = scmp.lt.s32.totalorder %s49_s11, %s49_s11 }
  0x2f   :  { %p4279_p5 = scmp.ne.s32.totalorder %s49_s11, %s4278_s0  ;;  %p4284_p7 = scmp.lt.s32.totalorder %s4278_s0, %s4278_s0 }
  0x31   :  { %p4285_p8 = por %p4284_p7, %p4283_p6 }
  0x33   :  { %p4286_p9 = pnand %p4285_p8, %p4279_p5 }
  0x35   :  { %4289 = shalt.err (!%p4286_p9)
}
  0x36   :  { %54 = dma.hbm_to_vmem [thread:$0]  %s5139_s2, 8192, %s49_s11, [#allocation8], %s4389_s15, %s4389_s15, %s4390_s16  }
  0x37   :  { %s4290_s27 = scalar_lea.hbm %s5140_s3, 64 }
  0x38   :  { %p4291_p10 = scmp.ne.s32.totalorder %s5140_s3, %s4290_s27  ;;  %p4294_p11 = scmp.lt.u32.totalorder %s4290_s27, %s5140_s3 }
  0x3a   :  { %p4296_p12 = pnand %p4294_p11, %p4291_p10 }
  0x3c   :  { %4299 = shalt.err (!%p4296_p12)
}
  0x3d   :  { %s4300_s12 = scalar_lea.vmem %s62_s13, 64  ;;  %p4305_p0 = scmp.lt.s32.totalorder %s62_s13, %s62_s13 }
  0x3e   :  { %p4301_p13 = scmp.ne.s32.totalorder %s62_s13, %s4300_s12  ;;  %p4306_p1 = scmp.lt.s32.totalorder %s4300_s12, %s4300_s12 }
  0x40   :  { %p4307_p2 = por %p4306_p1, %p4305_p0 }
  0x42   :  { %p4308_p3 = pnand %p4307_p2, %p4301_p13 }
  0x44   :  { %4311 = shalt.err (!%p4308_p3)
}
  0x45   :  { %64 = dma.hbm_to_vmem [thread:$0]  %s5140_s3, 64, %s62_s13, [#allocation11]  }
  0x46   :  { %4378 = dma.done.wait [#allocation5], 1024  }
  0x47   :  { %4379 = vsyncadd [#allocation5], 4294966272 }
  0x48   :  { %4380 = dma.done.wait [#allocation8], 9216  }
  0x49   :  { %4381 = vsyncadd [#allocation8], 4294958080 }
  0x4a   :  { %4382 = dma.done.wait [#allocation11], 64  }
  0x4b   :  { %4383 = vsyncadd [#allocation11], 4294967232  ;;  %v5146_v0 = vmov 0.0   ;;  %v98_v1 = vld [vmem:[#allocation9 + $0x8] sm:$0xff]  ;;  %v100_v3 = vld [vmem:[#allocation9 + $0x18] sm:$0xff]  ;;  %vm323_vm0 = vcmask 1041409  }
  0x4c   :  { %236 = vmatprep.mubr.f32.mxu0 %v5146_v0  ;;  %307 = vmatprep.mubr.f32.mxu1 %v5146_v0  ;;  %v102_v2 = vld [vmem:[#allocation9 + $0x28] sm:$0xff]  ;;  %v104_v5 = vld [vmem:[#allocation9 + $0x38] sm:$0xff]  ;;  %v97_v6 = vld [vmem:[#allocation9] sm:$0xff]  ;;  %vm326_vm1 = vcmask 1042434   ;;  %vm329_vm2 = vcmask 1043459   ;;  %vm332_vm3 = vcmask 1044484  }
  0x4d   :  { %v4505_v4 = vpack.c.bf16 %v102_v2, %v98_v1  ;;  %v101_v7 = vld [vmem:[#allocation9 + $0x20] sm:$0xff]  ;;  %v4507_v8 = vpack.c.bf16 %v104_v5, %v100_v3  ;;  %v99_v10 = vld [vmem:[#allocation9 + $0x10] sm:$0xff]  ;;  %v106_v12 = vld [vmem:[#allocation9 + $0x48] sm:$0xff]  ;;  %vm335_vm4 = vcmask 1045509   ;;  %vm338_vm5 = vcmask 1046534   ;;  %s4399_s14 = smov [#allocation15]  }
  0x4e   :  { %v4509_v9 = vpack.c.bf16 %v101_v7, %v97_v6  ;;  %v103_v11 = vld [vmem:[#allocation9 + $0x30] sm:$0xff]  ;;  %v110_v14 = vld [vmem:[#allocation9 + $0x68] sm:$0xff]  ;;  %v108_v15 = vld [vmem:[#allocation9 + $0x58] sm:$0xff]  ;;  %vm341_vm6 = vcmask 1047559   ;;  %vm343_vm7 = vcmask 130048   ;;  %s3457_s17 = sshll.u32 %s4399_s14, 4  ;;  %s5085_s17 = int_to_ptr.vmem [resolvable:$true] %s3457_s17 }
  0x4f   :  { %3524 = vmatprep.subr.bf16.mxu0 %v4505_v4  ;;  %v4512_v13 = vpack.c.bf16 %v103_v11, %v99_v10  ;;  %v112_v16 = vld [vmem:[#allocation9 + $0x78] sm:$0xff]  ;;  %3556 = vmatprep.subr.bf16.mxu1 %v4507_v8  ;;  %v4516_v17 = vpack.c.bf16 %v110_v14, %v106_v12  ;;  %v105_v19 = vld [vmem:[#allocation9 + $0x40] sm:$0xff]  ;;  %v107_v21 = vld [vmem:[#allocation9 + $0x50] sm:$0xff] }
  0x50   :  { %3526 = vmatpush1.bf16.msra.mxu0 %v4509_v9  ;;  %v4518_v18 = vpack.c.bf16 %v112_v16, %v108_v15  ;;  %v109_v20 = vld [vmem:[#allocation9 + $0x60] sm:$0xff]  ;;  %v111_v23 = vld [vmem:[#allocation9 + $0x70] sm:$0xff]  ;;  %v114_v24 = vld [vmem:[#allocation9 + $0x88] sm:$0xff] }
  0x51   :  { %3558 = vmatpush1.bf16.msra.mxu1 %v4512_v13  ;;  %v4521_v22 = vpack.c.bf16 %v109_v20, %v105_v19  ;;  %v118_v25 = vld [vmem:[#allocation9 + $0xa8] sm:$0xff]  ;;  %3528 = vmatprep.subr.bf16.mxu0 %v4516_v17  ;;  %v4525_v26 = vpack.c.bf16 %v111_v23, %v107_v21  ;;  %v116_v28 = vld [vmem:[#allocation9 + $0x98] sm:$0xff]  ;;  %v113_v30 = vld [vmem:[#allocation9 + $0x80] sm:$0xff] }
  0x52   :  { %3560 = vmatprep.subr.bf16.mxu1 %v4518_v18  ;;  %v4527_v27 = vpack.c.bf16 %v118_v25, %v114_v24  ;;  %v120_v29 = vld [vmem:[#allocation9 + $0xb8] sm:$0xff]  ;;  %v117_v32 = vld [vmem:[#allocation9 + $0xa0] sm:$0xff]  ;;  %v115_v33 = vld [vmem:[#allocation9 + $0x90] sm:$0xff] }
  0x53   :  { %v4529_v31 = vpack.c.bf16 %v120_v29, %v116_v28  ;;  %v119_v34 = vld [vmem:[#allocation9 + $0xb0] sm:$0xff]  ;;  %v4532_v35 = vpack.c.bf16 %v117_v32, %v113_v30  ;;  %v122_v36 = vld [vmem:[#allocation9 + $0xc8] sm:$0xff]  ;;  %v124_v38 = vld [vmem:[#allocation9 + $0xd8] sm:$0xff] }
  0x54   :  { %3530 = vmatpush1.bf16.msra.mxu0 %v4521_v22  ;;  %v126_v37 = vld [vmem:[#allocation9 + $0xe8] sm:$0xff]  ;;  %v4536_v39 = vpack.c.bf16 %v119_v34, %v115_v33  ;;  %v128_v41 = vld [vmem:[#allocation9 + $0xf8] sm:$0xff]  ;;  %v121_v42 = vld [vmem:[#allocation9 + $0xc0] sm:$0xff] }
  0x55   :  { %3562 = vmatpush1.bf16.msra.mxu1 %v4525_v26  ;;  %3532 = vmatprep.subr.bf16.mxu0 %v4527_v27  ;;  %v4538_v40 = vpack.c.bf16 %v126_v37, %v122_v36  ;;  %v125_v43 = vld [vmem:[#allocation9 + $0xe0] sm:$0xff]  ;;  %v4541_v44 = vpack.c.bf16 %v128_v41, %v124_v38  ;;  %v123_v45 = vld [vmem:[#allocation9 + $0xd0] sm:$0xff]  ;;  %v130_v47 = vld [vmem:[#allocation9 + $0x108] sm:$0xff] }
  0x56   :  { %3564 = vmatprep.subr.bf16.mxu1 %v4529_v31  ;;  %v127_v46 = vld [vmem:[#allocation9 + $0xf0] sm:$0xff]  ;;  %v134_v48 = vld [vmem:[#allocation9 + $0x128] sm:$0xff]  ;;  %v132_v49 = vld [vmem:[#allocation9 + $0x118] sm:$0xff]  ;;  %v4544_v51 = vpack.c.bf16 %v125_v43, %v121_v42 }
  0x57   :  { %v136_v50 = vld [vmem:[#allocation9 + $0x138] sm:$0xff]  ;;  %v4548_v52 = vpack.c.bf16 %v127_v46, %v123_v45  ;;  %v4550_v53 = vpack.c.bf16 %v134_v48, %v130_v47  ;;  %v129_v54 = vld [vmem:[#allocation9 + $0x100] sm:$0xff]  ;;  %v131_v56 = vld [vmem:[#allocation9 + $0x110] sm:$0xff] }
  0x58   :  { %3534 = vmatpush1.bf16.msra.mxu0 %v4532_v35  ;;  %v133_v55 = vld [vmem:[#allocation9 + $0x120] sm:$0xff]  ;;  %v4553_v57 = vpack.c.bf16 %v136_v50, %v132_v49  ;;  %v135_v58 = vld [vmem:[#allocation9 + $0x130] sm:$0xff]  ;;  %v138_v59 = vld [vmem:[#allocation9 + $0x148] sm:$0xff] }
  0x59   :  { %3566 = vmatpush1.bf16.msra.mxu1 %v4536_v39  ;;  %3536 = vmatprep.subr.bf16.mxu0 %v4538_v40  ;;  %v142_v60 = vld [vmem:[#allocation9 + $0x168] sm:$0xff]  ;;  %v140_v61 = vld [vmem:[#allocation9 + $0x158] sm:$0xff]  ;;  %v4556_v63 = vpack.c.bf16 %v133_v55, %v129_v54  ;;  %v4560_v1 = vpack.c.bf16 %v135_v58, %v131_v56  ;;  %v137_v3 = vld [vmem:[#allocation9 + $0x140] sm:$0xff] }
  0x5a   :  { %3568 = vmatprep.subr.bf16.mxu1 %v4541_v44  ;;  %v144_v62 = vld [vmem:[#allocation9 + $0x178] sm:$0xff]  ;;  %v4562_v2 = vpack.c.bf16 %v142_v60, %v138_v59  ;;  %v141_v5 = vld [vmem:[#allocation9 + $0x160] sm:$0xff]  ;;  %v139_v6 = vld [vmem:[#allocation9 + $0x150] sm:$0xff] }
  0x5b   :  { %v4565_v7 = vpack.c.bf16 %v144_v62, %v140_v61  ;;  %v143_v10 = vld [vmem:[#allocation9 + $0x170] sm:$0xff]  ;;  %v146_v11 = vld [vmem:[#allocation9 + $0x188] sm:$0xff]  ;;  %v148_v14 = vld [vmem:[#allocation9 + $0x198] sm:$0xff]  ;;  %v4568_v16 = vpack.c.bf16 %v141_v5, %v137_v3 }
  0x5c   :  { %3538 = vmatpush1.bf16.msra.mxu0 %v4544_v51  ;;  %v150_v12 = vld [vmem:[#allocation9 + $0x1a8] sm:$0xff]  ;;  %v152_v15 = vld [vmem:[#allocation9 + $0x1b8] sm:$0xff]  ;;  %v145_v19 = vld [vmem:[#allocation9 + $0x180] sm:$0xff]  ;;  %v4572_v20 = vpack.c.bf16 %v143_v10, %v139_v6 }
  0x5d   :  { %3570 = vmatpush1.bf16.msra.mxu1 %v4548_v52  ;;  %3540 = vmatprep.subr.bf16.mxu0 %v4550_v53  ;;  %v4574_v21 = vpack.c.bf16 %v150_v12, %v146_v11  ;;  %v149_v23 = vld [vmem:[#allocation9 + $0x1a0] sm:$0xff]  ;;  %v147_v24 = vld [vmem:[#allocation9 + $0x190] sm:$0xff]  ;;  %v4577_v28 = vpack.c.bf16 %v152_v15, %v148_v14  ;;  %v154_v29 = vld [vmem:[#allocation9 + $0x1c8] sm:$0xff] }
  0x5e   :  { %3572 = vmatprep.subr.bf16.mxu1 %v4553_v57  ;;  %v151_v25 = vld [vmem:[#allocation9 + $0x1b0] sm:$0xff]  ;;  %v158_v30 = vld [vmem:[#allocation9 + $0x1e8] sm:$0xff]  ;;  %v156_v32 = vld [vmem:[#allocation9 + $0x1d8] sm:$0xff]  ;;  %v4580_v37 = vpack.c.bf16 %v149_v23, %v145_v19 }
  0x5f   :  { %v160_v33 = vld [vmem:[#allocation9 + $0x1f8] sm:$0xff]  ;;  %v153_v34 = vld [vmem:[#allocation9 + $0x1c0] sm:$0xff]  ;;  %v155_v38 = vld [vmem:[#allocation9 + $0x1d0] sm:$0xff]  ;;  %v4584_v45 = vpack.c.bf16 %v151_v25, %v147_v24  ;;  %v4586_v46 = vpack.c.bf16 %v158_v30, %v154_v29 }
  0x60   :  { %3542 = vmatpush1.bf16.msra.mxu0 %v4556_v63  ;;  %v157_v36 = vld [vmem:[#allocation9 + $0x1e0] sm:$0xff]  ;;  %v159_v41 = vld [vmem:[#allocation9 + $0x1f0] sm:$0xff]  ;;  %v90_v42 = vld [vmem:[#allocation7 + $0x8] sm:$0xff]  ;;  %v4589_v50 = vpack.c.bf16 %v160_v33, %v156_v32 }
  0x61   :  { %3574 = vmatpush1.bf16.msra.mxu1 %v4560_v1  ;;  %3544 = vmatprep.subr.bf16.mxu0 %v4562_v2  ;;  %v165_v43 = vld [vmem:[#allocation4 + $0x8] sm:$0x1]  ;;  %v166_v47 = vld [vmem:[#allocation4 + $0x10] sm:$0x1]  ;;  %v167_v48 = vld [vmem:[#allocation4 + $0x18] sm:$0x1]  ;;  %v4592_v3 = vpack.c.bf16 %v157_v36, %v153_v34  ;;  %v4596_v6 = vpack.c.bf16 %v159_v41, %v155_v38 }
  0x62   :  { %3576 = vmatprep.subr.bf16.mxu1 %v4565_v7  ;;  %v168_v49 = vld [vmem:[#allocation4 + $0x20] sm:$0x1]  ;;  %v94_v54 = vld [vmem:[#allocation7 + $0x28] sm:$0xff]  ;;  %v92_v55 = vld [vmem:[#allocation7 + $0x18] sm:$0xff]  ;;  %v322_v60 = vrot.slane %v165_v43, 7  ;;  %v325_v61 = vrot.slane %v166_v47, 6 }
  0x63   :  { %v164_v56 = vld [vmem:[#allocation4] sm:$0x1]  ;;  %v96_v58 = vld [vmem:[#allocation7 + $0x38] sm:$0xff]  ;;  %v169_v59 = vld [vmem:[#allocation4 + $0x28] sm:$0x1]  ;;  %v328_v62 = vrot.slane %v167_v48, 5  ;;  %v4598_v10 = vpack.c.bf16 %v94_v54, %v90_v42 }
  0x64   :  { %3546 = vmatpush1.bf16.msra.mxu0 %v4568_v16  ;;  %v331_v5 = vrot.slane %v168_v49, 4  ;;  %v89_v11 = vld [vmem:[#allocation7] sm:$0xff]  ;;  %v324_v14 = vsel %vm323_vm0, %v322_v60, %v164_v56  ;;  %v4602_v15 = vpack.c.bf16 %v96_v58, %v92_v55  ;;  %v91_v19 = vld [vmem:[#allocation7 + $0x10] sm:$0xff]  ;;  %v334_v29 = vrot.slane %v169_v59, 3  ;;  %v171_v38 = vld [vmem:[#allocation4 + $0x38] sm:$0x1] }
  0x65   :  { %3578 = vmatpush1.bf16.msra.mxu1 %v4572_v20  ;;  %3548 = vmatprep.subr.bf16.mxu0 %v4574_v21  ;;  %v93_v12 = vld [vmem:[#allocation7 + $0x20] sm:$0xff]  ;;  %v95_v23 = vld [vmem:[#allocation7 + $0x30] sm:$0xff]  ;;  %v327_v25 = vsel %vm326_vm1, %v325_v61, %v324_v14  ;;  %v340_v43 = vrot.slane %v171_v38, 1  ;;  %v489_v49 = vlaneseq }
  0x66   :  { %3580 = vmatprep.subr.bf16.mxu1 %v4577_v28  ;;  %v170_v24 = vld [vmem:[#allocation4 + $0x30] sm:$0x1]  ;;  %v330_v30 = vsel %vm329_vm2, %v328_v62, %v327_v25  ;;  %v85_v32 = vld [vmem:[%s5141_s4] sm:$0xff]  ;;  %v4610_v33 = vpack.c.bf16 %v93_v12, %v89_v11  ;;  %v4615_v36 = vpack.c.bf16 %v95_v23, %v91_v19 }
  0x67   :  { %v333_v34 = vsel %vm332_vm3, %v331_v5, %v330_v30  ;;  %v337_v41 = vrot.slane %v170_v24, 2  ;;  %v490_v54 = vshrl.u32 %v489_v49, 7  ;;  %v161_v56 = vld [vmem:[#allocation10] sm:$0xf] }
  0x68   :  { %3550 = vmatpush1.bf16.msra.mxu0 %v4580_v37  ;;  %v336_v42 = vsel %vm335_vm4, %v334_v29, %v333_v34 }
  0x69   :  { %3582 = vmatpush1.bf16.msra.mxu1 %v4584_v45  ;;  %3552 = vmatprep.subr.bf16.mxu0 %v4586_v46  ;;  %v339_v47 = vsel %vm338_vm5, %v337_v41, %v336_v42  ;;  %v491_v55 = vsub.s32 0, %v490_v54  ;;  %v495_v58 = vsub.s32 1, %v490_v54  ;;  %v499_v60 = vsub.s32 2, %v490_v54 }
  0x6a   :  { %3584 = vmatprep.subr.bf16.mxu1 %v4589_v50  ;;  %v342_v48 = vsel %vm341_vm6, %v340_v43, %v339_v47  ;;  %v503_v19 = vsub.s32 3, %v490_v54 }
  0x6b   :  { %v4663_v59 = vrot.slane %v161_v56, %v491_v55  ;;  %v4665_v61 = vrot.slane %v161_v56, %v495_v58  ;;  %v4668_v12 = vrot.slane %v161_v56, %v499_v60  ;;  %v87_v55 = vld [vmem:[%s5142_s5] sm:$0xff]  ;;  %s4398_s5 = smov [#allocation13]  }
  0x6c   :  { %3554 = vmatpush1.bf16.msra.mxu0 %v4592_v3  ;;  %s3447_s13 = sshll.u32 %s4398_s5, 4  ;;  %s3448_s13 = int_to_ptr.vmem [resolvable:$true] %s3447_s13 }
  0x6d   :  { %3586 = vmatpush1.bf16.msra.mxu1 %v4596_v6  ;;  %3588 = vmatprep.subr.bf16.mxu0 %v4598_v10  ;;  %s4312_s18 = scalar_lea.vmem %s3448_s13, 128  ;;  %p4317_p5 = scmp.lt.s32.totalorder %s3448_s13, %s3448_s13 }
  0x6e   :  { %3592 = vmatprep.subr.bf16.mxu1 %v4602_v15  ;;  %p4313_p4 = scmp.ne.s32.totalorder %s3448_s13, %s4312_s18  ;;  %p4318_p6 = scmp.lt.s32.totalorder %s4312_s18, %s4312_s18 }
  0x6f   :  { %237 = vmatmul.mubr.f32.vlgmr.msra.gmra.mrb[0].mxu0 %v85_v32 }
  0x70   :  { %308 = vmatmul.mubr.f32.vlgmr.msra.gmra.mrb[0].mxu1 %v85_v32  ;;  %3590 = vmatpush1.bf16.msra.mxu0 %v4610_v33  ;;  %v4672_v32 = vrot.slane %v161_v56, %v503_v19  ;;  %p4319_p7 = por %p4318_p6, %p4317_p5 }
  0x71   :  { %3594 = vmatpush1.bf16.msra.mxu1 %v4615_v36  ;;  %410 = vmatprep.mubr.f32.mxu0 %v5146_v0 }
  0x72   :  { %481 = vmatprep.mubr.f32.mxu1 %v5146_v0  ;;  %3596 = vmatprep.subr.bf16.mxu0 %v4505_v4  ;;  %p4320_p8 = pnand %p4319_p7, %p4313_p4 }
  0x73   :  { %3628 = vmatprep.subr.bf16.mxu1 %v4507_v8 }
  0x77   :  { %3475 = vmatmul.mubr.msk.f32.vlgmr.msra.gmra.mrb[0].mxu0 %vm343_vm7, %v342_v48 }
  0x78   :  { %3476 = vmatmul.mubr.msk.f32.vlgmr.msra.gmra.mrb[0].mxu1 %vm343_vm7, %v342_v48  ;;  %3598 = vmatpush1.bf16.msra.mxu0 %v4509_v9  ;;  %v598_v48 = vld [vmem:[#allocation4 + $0x9] sm:$0x1] }
  0x79   :  { %3630 = vmatpush1.bf16.msra.mxu1 %v4512_v13  ;;  %3600 = vmatprep.subr.bf16.mxu0 %v4516_v17 }
  0x7a   :  { %3632 = vmatprep.subr.bf16.mxu1 %v4518_v18  ;;  %669 = vmatprep.mubr.f32.mxu0 %v5146_v0 }
  0x7b   :  { %740 = vmatprep.mubr.f32.mxu1 %v5146_v0 }
  0x7c   :  { %3602 = vmatpush1.bf16.msra.mxu0 %v4521_v22 }
  0x7d   :  { %3634 = vmatpush1.bf16.msra.mxu1 %v4525_v26  ;;  %3604 = vmatprep.subr.bf16.mxu0 %v4527_v27 }
  0x7e   :  { %3636 = vmatprep.subr.bf16.mxu1 %v4529_v31 }
  0x80   :  { %3606 = vmatpush1.bf16.msra.mxu0 %v4532_v35 }
  0x81   :  { %3638 = vmatpush1.bf16.msra.mxu1 %v4536_v39  ;;  %3608 = vmatprep.subr.bf16.mxu0 %v4538_v40 }
  0x82   :  { %3640 = vmatprep.subr.bf16.mxu1 %v4541_v44 }
  0x84   :  { %3610 = vmatpush1.bf16.msra.mxu0 %v4544_v51 }
  0x85   :  { %3642 = vmatpush1.bf16.msra.mxu1 %v4548_v52  ;;  %3612 = vmatprep.subr.bf16.mxu0 %v4550_v53 }
  0x86   :  { %3644 = vmatprep.subr.bf16.mxu1 %v4553_v57 }
  0x88   :  { %3614 = vmatpush1.bf16.msra.mxu0 %v4556_v63 }
  0x89   :  { %3646 = vmatpush1.bf16.msra.mxu1 %v4560_v1  ;;  %3616 = vmatprep.subr.bf16.mxu0 %v4562_v2 }
  0x8a   :  { %3648 = vmatprep.subr.bf16.mxu1 %v4565_v7 }
  0x8c   :  { %3618 = vmatpush1.bf16.msra.mxu0 %v4568_v16 }
  0x8d   :  { %3650 = vmatpush1.bf16.msra.mxu1 %v4572_v20  ;;  %3620 = vmatprep.subr.bf16.mxu0 %v4574_v21 }
  0x8e   :  { %3652 = vmatprep.subr.bf16.mxu1 %v4577_v28 }
  0x90   :  { %3622 = vmatpush1.bf16.msra.mxu0 %v4580_v37 }
  0x91   :  { %3654 = vmatpush1.bf16.msra.mxu1 %v4584_v45  ;;  %3624 = vmatprep.subr.bf16.mxu0 %v4586_v46 }
  0x92   :  { %3656 = vmatprep.subr.bf16.mxu1 %v4589_v50 }
  0x94   :  { %3626 = vmatpush1.bf16.msra.mxu0 %v4592_v3 }
  0x95   :  { %3658 = vmatpush1.bf16.msra.mxu1 %v4596_v6  ;;  %3660 = vmatprep.subr.bf16.mxu0 %v4598_v10 }
  0x96   :  { %3664 = vmatprep.subr.bf16.mxu1 %v4602_v15 }
 0x14a   :  { %v412_v62 = vpop.f32.mrb[0].mxu0 }
 0x14b   :  { %v509_v5 = vadd.f32 %v4663_v59, %v412_v62  ;;  %v483_v11 = vpop.f32.mrb[0].mxu1  ;;  %v414_v14 = vpop.f32.mrb[1].mxu0  ;;  %v599_v62 = vld [vmem:[#allocation4 + $0x11] sm:$0x1] }
 0x14c   :  { %v510_v23 = vadd.f32 %v4665_v61, %v414_v14  ;;  %v485_v24 = vpop.f32.mrb[1].mxu1  ;;  %v511_v30 = vadd.f32 %v4668_v12, %v483_v11  ;;  %v597_v14 = vld [vmem:[#allocation4 + $0x1] sm:$0x1] }
 0x14d   :  { %v513_v25 = vmul.f32 0.5, %v509_v5  ;;  %v512_v34 = vadd.f32 %v4672_v32, %v485_v24  ;;  %v755_v5 = vrot.slane %v598_v48, 7  ;;  %v757_v24 = vrot.slane %v599_v62, 6 }
 0x14e   :  { %v517_v29 = vmul.f32 0.5, %v510_v23  ;;  %v600_v23 = vld [vmem:[#allocation4 + $0x19] sm:$0x1] }
 0x14f   :  { %4144 = vtanh.f32 %v513_v25  ;;  %v522_v38 = vmul.f32 0.5, %v512_v34  ;;  %v756_v25 = vsel %vm323_vm0, %v755_v5, %v597_v14  ;;  %v601_v34 = vld [vmem:[#allocation4 + $0x21] sm:$0x1] }
 0x150   :  { %4146 = vtanh.f32 %v517_v29  ;;  %v4397_v29 = vmov 1966171168  }
 0x151   :  { %4148 = vtanh.f32 %v511_v30  ;;  %v534_v30 = vunpack.c.l.s4 %v4397_v29 }
 0x152   :  { %4150 = vtanh.f32 %v522_v38  ;;  %v759_v38 = vrot.slane %v600_v23, 5  ;;  %v604_v23 = vld [vmem:[#allocation4 + $0x39] sm:$0x1] }
 0x153   :  { %v535_v48 = vunpack.c.0.s8 %v534_v30 }
 0x155   :  { %v4685_v62 = vsub.s32 %v535_v48, %v490_v54  ;;  %v767_v54 = vrot.slane %v604_v23, 1 }
 0x159   :  { %v4145_v41 = vpop.eup %4144 }
 0x15a   :  { %v4147_v42 = vpop.eup %4146  ;;  %v515_v43 = vadd.f32 1.0, %v4145_v41 }
 0x15b   :  { %v519_v47 = vadd.f32 1.0, %v4147_v42  ;;  %v4149_v58 = vpop.eup %4148  ;;  %v758_v42 = vsel %vm326_vm1, %v757_v24, %v756_v25 }
 0x15c   :  { %v516_v49 = vmul.f32 0.5, %v515_v43  ;;  %v4151_v41 = vpop.eup %4150  ;;  %v602_v43 = vld [vmem:[#allocation4 + $0x29] sm:$0x1] }
 0x15d   :  { %v520_v60 = vmul.f32 0.5, %v519_v47  ;;  %v761_v47 = vrot.slane %v601_v34, 4 }
 0x15e   :  { %v527_v56 = vmul.f32 %v4149_v58, %v516_v49  ;;  %v524_v49 = vadd.f32 1.0, %v4151_v41  ;;  %v603_v58 = vld [vmem:[#allocation4 + $0x31] sm:$0x1] }
 0x15f   :  { %v526_v11 = vmul.f32 %v520_v60, %v87_v55  ;;  %v760_v55 = vsel %vm329_vm2, %v759_v38, %v758_v42  ;;  %v763_v60 = vrot.slane %v602_v43, 3  ;;  %v765_v14 = vrot.slane %v603_v58, 2 }
 0x160   :  { %v525_v5 = vmul.f32 0.5, %v524_v49  ;;  %v5148_v42 = vmov 0.0  }
 0x161   :  { %v4678_v19 = vadd.f32 %v527_v56, %v526_v11  ;;  %v762_v56 = vsel %vm332_vm3, %v761_v47, %v760_v55 }
 0x162   :  { %v764_v0 = vsel %vm335_vm4, %v763_v60, %v762_v56 }
 0x163   :  { %4152 = vtanh.f32 %v4678_v19  ;;  %v766_v30 = vsel %vm338_vm5, %v765_v14, %v764_v0 }
 0x164   :  { %v768_v49 = vsel %vm341_vm6, %v767_v54, %v766_v30 }
 0x16d   :  { %v4153_v11 = vpop.eup %4152 }
 0x16e   :  { %v530_v29 = vmul.f32 %v4153_v11, %v525_v5 }
 0x170   :  { %v532_v24 = vcombine.high %v530_v29, %v530_v29  ;;  %v539_v25 = vrot.slane %v530_v29, %v4685_v62  ;;  %670 = vmatmul.mubr.f32.vlgmr.msra.gmra.mrb[2].mxu0 %v530_v29  ;;  %741 = vmatmul.mubr.f32.vlgmr.msra.gmra.mrb[2].mxu1 %v530_v29 }
 0x171   :  { %3662 = vmatpush1.bf16.msra.mxu0 %v4610_v33  ;;  %3666 = vmatpush1.bf16.msra.mxu1 %v4615_v36 }
 0x172   :  { %v546_v34 = vrot.slane %v532_v24, %v4685_v62  ;;  %v547_v38 = vcombine.high %v539_v25, %v539_v25  ;;  %v555_v41 = vrot.slane %v539_v25, %v4685_v62  ;;  %3477 = vst.sshfl [vmem:[#allocation12] sm:$0x1 pattern:$0x73625140] %v539_v25  ;;  %835 = vmatprep.mubr.f32.mxu0 %v5148_v42 }
 0x173   :  { %906 = vmatprep.mubr.f32.mxu1 %v5148_v42  ;;  %3668 = vmatprep.subr.bf16.mxu0 %v4505_v4 }
 0x174   :  { %3700 = vmatprep.subr.bf16.mxu1 %v4507_v8  ;;  %v548_v43 = vcombine.high %v546_v34, %v546_v34  ;;  %v562_v47 = vrot.slane %v546_v34, %v4685_v62  ;;  %v569_v0 = vrot.slane %v547_v38, %v4685_v62  ;;  %v577_v48 = vcombine.high %v555_v41, %v555_v41 }
 0x175   :  { %3478 = vst.sshfl [vmem:[#allocation12 + $0x8] sm:$0x1 pattern:$0x73625140] %v547_v38 }
 0x176   :  { %3479 = vst.sshfl [vmem:[#allocation12 + $0x20] sm:$0x1 pattern:$0x73625140] %v546_v34  ;;  %v576_v55 = vrot.slane %v548_v43, %v4685_v62  ;;  %v578_v58 = vcombine.high %v562_v47, %v562_v47  ;;  %v579_v60 = vcombine.high %v569_v0, %v569_v0  ;;  %591 = vst [vmem:[#allocation12 + $0x10] sm:$0x1] %v577_v48 }
 0x177   :  { %3480 = vst.sshfl [vmem:[#allocation12 + $0x28] sm:$0x1 pattern:$0x73625140] %v548_v43  ;;  %v1002_v48 = vld [vmem:[#allocation4 + $0xa] sm:$0x1] }
 0x178   :  { %v580_v56 = vcombine.high %v576_v55, %v576_v55  ;;  %592 = vst [vmem:[#allocation12 + $0x18] sm:$0x1] %v579_v60  ;;  %595 = vst [vmem:[#allocation12 + $0x30] sm:$0x1] %v578_v58  ;;  %3481 = vmatmul.mubr.msk.f32.vlgmr.msra.gmra.mrb[2].mxu0 %vm343_vm7, %v768_v49  ;;  %3482 = vmatmul.mubr.msk.f32.vlgmr.msra.gmra.mrb[2].mxu1 %vm343_vm7, %v768_v49 }
 0x179   :  { %3670 = vmatpush1.bf16.msra.mxu0 %v4509_v9  ;;  %3702 = vmatpush1.bf16.msra.mxu1 %v4512_v13 }
 0x17a   :  { %596 = vst [vmem:[#allocation12 + $0x38] sm:$0x1] %v580_v56  ;;  %3672 = vmatprep.subr.bf16.mxu0 %v4516_v17  ;;  %3704 = vmatprep.subr.bf16.mxu1 %v4518_v18  ;;  %v1003_v56 = vld [vmem:[#allocation4 + $0x12] sm:$0x1] }
 0x17b   :  { %1073 = vmatprep.mubr.f32.mxu0 %v5148_v42  ;;  %1144 = vmatprep.mubr.f32.mxu1 %v5148_v42 }
 0x17d   :  { %3674 = vmatpush1.bf16.msra.mxu0 %v4521_v22  ;;  %3706 = vmatpush1.bf16.msra.mxu1 %v4525_v26 }
 0x17e   :  { %3676 = vmatprep.subr.bf16.mxu0 %v4527_v27  ;;  %3708 = vmatprep.subr.bf16.mxu1 %v4529_v31 }
 0x181   :  { %3678 = vmatpush1.bf16.msra.mxu0 %v4532_v35  ;;  %3710 = vmatpush1.bf16.msra.mxu1 %v4536_v39 }
 0x182   :  { %3680 = vmatprep.subr.bf16.mxu0 %v4538_v40  ;;  %3712 = vmatprep.subr.bf16.mxu1 %v4541_v44 }
 0x185   :  { %3682 = vmatpush1.bf16.msra.mxu0 %v4544_v51  ;;  %3714 = vmatpush1.bf16.msra.mxu1 %v4548_v52 }
 0x186   :  { %3684 = vmatprep.subr.bf16.mxu0 %v4550_v53  ;;  %3716 = vmatprep.subr.bf16.mxu1 %v4553_v57 }
 0x189   :  { %3686 = vmatpush1.bf16.msra.mxu0 %v4556_v63  ;;  %3718 = vmatpush1.bf16.msra.mxu1 %v4560_v1 }
 0x18a   :  { %3688 = vmatprep.subr.bf16.mxu0 %v4562_v2  ;;  %3720 = vmatprep.subr.bf16.mxu1 %v4565_v7 }
 0x18d   :  { %3690 = vmatpush1.bf16.msra.mxu0 %v4568_v16  ;;  %3722 = vmatpush1.bf16.msra.mxu1 %v4572_v20 }
 0x18e   :  { %3692 = vmatprep.subr.bf16.mxu0 %v4574_v21  ;;  %3724 = vmatprep.subr.bf16.mxu1 %v4577_v28 }
 0x191   :  { %3694 = vmatpush1.bf16.msra.mxu0 %v4580_v37  ;;  %3726 = vmatpush1.bf16.msra.mxu1 %v4584_v45 }
 0x192   :  { %3696 = vmatprep.subr.bf16.mxu0 %v4586_v46  ;;  %3728 = vmatprep.subr.bf16.mxu1 %v4589_v50 }
 0x195   :  { %3698 = vmatpush1.bf16.msra.mxu0 %v4592_v3  ;;  %3730 = vmatpush1.bf16.msra.mxu1 %v4596_v6 }
 0x196   :  { %3732 = vmatprep.subr.bf16.mxu0 %v4598_v10  ;;  %3736 = vmatprep.subr.bf16.mxu1 %v4602_v15 }
 0x24b   :  { %v837_v5 = vpop.f32.mrb[2].mxu0  ;;  %v908_v11 = vpop.f32.mrb[2].mxu1 }
 0x24c   :  { %v913_v14 = vadd.f32 %v837_v5, %v4663_v59  ;;  %v839_v29 = vpop.f32.mrb[3].mxu0  ;;  %v910_v23 = vpop.f32.mrb[3].mxu1  ;;  %v915_v54 = vadd.f32 %v908_v11, %v4668_v12  ;;  %v1159_v5 = vrot.slane %v1002_v48, 7  ;;  %v1001_v11 = vld [vmem:[#allocation4 + $0x2] sm:$0x1] }
 0x24d   :  { %v914_v24 = vadd.f32 %v839_v29, %v4665_v61  ;;  %v916_v34 = vadd.f32 %v910_v23, %v4672_v32  ;;  %v1161_v23 = vrot.slane %v1003_v56, 6 }
 0x24e   :  { %v917_v25 = vmul.f32 0.5, %v913_v14 }
 0x24f   :  { %v921_v30 = vmul.f32 0.5, %v914_v24  ;;  %v926_v38 = vmul.f32 0.5, %v916_v34  ;;  %v1004_v24 = vld [vmem:[#allocation4 + $0x1a] sm:$0x1] }
 0x250   :  { %4154 = vtanh.f32 %v917_v25  ;;  %v1160_v25 = vsel %vm323_vm0, %v1159_v5, %v1001_v11  ;;  %v1008_v5 = vld [vmem:[#allocation4 + $0x3a] sm:$0x1] }
 0x251   :  { %4156 = vtanh.f32 %v921_v30  ;;  %v1005_v30 = vld [vmem:[#allocation4 + $0x22] sm:$0x1] }
 0x252   :  { %4158 = vtanh.f32 %v915_v54  ;;  %v1163_v54 = vrot.slane %v1004_v24, 5 }
 0x253   :  { %4160 = vtanh.f32 %v926_v38  ;;  %v1162_v38 = vsel %vm326_vm1, %v1161_v23, %v1160_v25  ;;  %v1171_v25 = vrot.slane %v1008_v5, 1 }
 0x25a   :  { %v4155_v41 = vpop.eup %4154 }
 0x25b   :  { %v4157_v43 = vpop.eup %4156  ;;  %v919_v47 = vadd.f32 1.0, %v4155_v41  ;;  %v1006_v41 = vld [vmem:[#allocation4 + $0x2a] sm:$0x1] }
 0x25c   :  { %v923_v0 = vadd.f32 1.0, %v4157_v43  ;;  %v4159_v55 = vpop.eup %4158  ;;  %v1165_v43 = vrot.slane %v1005_v30, 4  ;;  %v1167_v48 = vrot.slane %v1006_v41, 3 }
 0x25d   :  { %v920_v49 = vmul.f32 0.5, %v919_v47  ;;  %v4161_v34 = vpop.eup %4160 }
 0x25e   :  { %v924_v58 = vmul.f32 0.5, %v923_v0  ;;  %v928_v47 = vadd.f32 1.0, %v4161_v34  ;;  %v1164_v0 = vsel %vm329_vm2, %v1163_v54, %v1162_v38 }
 0x25f   :  { %v931_v60 = vmul.f32 %v4159_v55, %v920_v49  ;;  %v1166_v49 = vsel %vm332_vm3, %v1165_v43, %v1164_v0 }
 0x260   :  { %v930_v14 = vmul.f32 %v924_v58, %v4678_v19  ;;  %v1007_v19 = vld [vmem:[#allocation4 + $0x32] sm:$0x1]  ;;  %v929_v55 = vmul.f32 0.5, %v928_v47 }
 0x262   :  { %v4743_v29 = vadd.f32 %v931_v60, %v930_v14  ;;  %v1169_v60 = vrot.slane %v1007_v19, 2  ;;  %v1168_v14 = vsel %vm335_vm4, %v1167_v48, %v1166_v49 }
 0x264   :  { %4162 = vtanh.f32 %v4743_v29  ;;  %v1170_v23 = vsel %vm338_vm5, %v1169_v60, %v1168_v14 }
 0x265   :  { %v1172_v0 = vsel %vm341_vm6, %v1171_v25, %v1170_v23 }
 0x26e   :  { %v4163_v58 = vpop.eup %4162 }
 0x26f   :  { %v934_v56 = vmul.f32 %v4163_v58, %v929_v55 }
 0x271   :  { %v936_v11 = vcombine.high %v934_v56, %v934_v56  ;;  %v943_v24 = vrot.slane %v934_v56, %v4685_v62  ;;  %1074 = vmatmul.mubr.f32.vlgmr.msra.gmra.mrb[4].mxu0 %v934_v56  ;;  %1145 = vmatmul.mubr.f32.vlgmr.msra.gmra.mrb[4].mxu1 %v934_v56 }
 0x272   :  { %3734 = vmatpush1.bf16.msra.mxu0 %v4610_v33  ;;  %3738 = vmatpush1.bf16.msra.mxu1 %v4615_v36 }
 0x273   :  { %v950_v30 = vrot.slane %v936_v11, %v4685_v62  ;;  %v951_v54 = vcombine.high %v943_v24, %v943_v24  ;;  %v959_v34 = vrot.slane %v943_v24, %v4685_v62  ;;  %3483 = vst.sshfl [vmem:[#allocation12 + $0x1] sm:$0x1 pattern:$0x73625140] %v943_v24  ;;  %1239 = vmatprep.mubr.f32.mxu0 %v5148_v42 }
 0x274   :  { %1310 = vmatprep.mubr.f32.mxu1 %v5148_v42  ;;  %3740 = vmatprep.subr.bf16.mxu0 %v4505_v4 }
 0x275   :  { %3772 = vmatprep.subr.bf16.mxu1 %v4507_v8  ;;  %v952_v38 = vcombine.high %v950_v30, %v950_v30  ;;  %v966_v41 = vrot.slane %v950_v30, %v4685_v62  ;;  %v973_v43 = vrot.slane %v951_v54, %v4685_v62  ;;  %v981_v47 = vcombine.high %v959_v34, %v959_v34 }
 0x276   :  { %3484 = vst.sshfl [vmem:[#allocation12 + $0x9] sm:$0x1 pattern:$0x73625140] %v951_v54 }
 0x277   :  { %3485 = vst.sshfl [vmem:[#allocation12 + $0x21] sm:$0x1 pattern:$0x73625140] %v950_v30  ;;  %v980_v19 = vrot.slane %v952_v38, %v4685_v62  ;;  %v982_v48 = vcombine.high %v966_v41, %v966_v41  ;;  %v983_v49 = vcombine.high %v973_v43, %v973_v43  ;;  %995 = vst [vmem:[#allocation12 + $0x11] sm:$0x1] %v981_v47 }
 0x278   :  { %3486 = vst.sshfl [vmem:[#allocation12 + $0x29] sm:$0x1 pattern:$0x73625140] %v952_v38  ;;  %v1406_v47 = vld [vmem:[#allocation4 + $0xb] sm:$0x1] }
 0x279   :  { %v984_v55 = vcombine.high %v980_v19, %v980_v19  ;;  %996 = vst [vmem:[#allocation12 + $0x19] sm:$0x1] %v983_v49  ;;  %999 = vst [vmem:[#allocation12 + $0x31] sm:$0x1] %v982_v48  ;;  %3487 = vmatmul.mubr.msk.f32.vlgmr.msra.gmra.mrb[4].mxu0 %vm343_vm7, %v1172_v0  ;;  %3488 = vmatmul.mubr.msk.f32.vlgmr.msra.gmra.mrb[4].mxu1 %vm343_vm7, %v1172_v0 }
 0x27a   :  { %3742 = vmatpush1.bf16.msra.mxu0 %v4509_v9  ;;  %3774 = vmatpush1.bf16.msra.mxu1 %v4512_v13 }
 0x27b   :  { %1000 = vst [vmem:[#allocation12 + $0x39] sm:$0x1] %v984_v55  ;;  %3744 = vmatprep.subr.bf16.mxu0 %v4516_v17  ;;  %3776 = vmatprep.subr.bf16.mxu1 %v4518_v18  ;;  %v1407_v55 = vld [vmem:[#allocation4 + $0x13] sm:$0x1] }
 0x27c   :  { %1477 = vmatprep.mubr.f32.mxu0 %v5148_v42  ;;  %1548 = vmatprep.mubr.f32.mxu1 %v5148_v42 }
 0x27e   :  { %3746 = vmatpush1.bf16.msra.mxu0 %v4521_v22  ;;  %3778 = vmatpush1.bf16.msra.mxu1 %v4525_v26 }
 0x27f   :  { %3748 = vmatprep.subr.bf16.mxu0 %v4527_v27  ;;  %3780 = vmatprep.subr.bf16.mxu1 %v4529_v31 }
 0x282   :  { %3750 = vmatpush1.bf16.msra.mxu0 %v4532_v35  ;;  %3782 = vmatpush1.bf16.msra.mxu1 %v4536_v39 }
 0x283   :  { %3752 = vmatprep.subr.bf16.mxu0 %v4538_v40  ;;  %3784 = vmatprep.subr.bf16.mxu1 %v4541_v44 }
 0x286   :  { %3754 = vmatpush1.bf16.msra.mxu0 %v4544_v51  ;;  %3786 = vmatpush1.bf16.msra.mxu1 %v4548_v52 }
 0x287   :  { %3756 = vmatprep.subr.bf16.mxu0 %v4550_v53  ;;  %3788 = vmatprep.subr.bf16.mxu1 %v4553_v57 }
 0x28a   :  { %3758 = vmatpush1.bf16.msra.mxu0 %v4556_v63  ;;  %3790 = vmatpush1.bf16.msra.mxu1 %v4560_v1 }
 0x28b   :  { %3760 = vmatprep.subr.bf16.mxu0 %v4562_v2  ;;  %3792 = vmatprep.subr.bf16.mxu1 %v4565_v7 }
 0x28e   :  { %3762 = vmatpush1.bf16.msra.mxu0 %v4568_v16  ;;  %3794 = vmatpush1.bf16.msra.mxu1 %v4572_v20 }
 0x28f   :  { %3764 = vmatprep.subr.bf16.mxu0 %v4574_v21  ;;  %3796 = vmatprep.subr.bf16.mxu1 %v4577_v28 }
 0x292   :  { %3766 = vmatpush1.bf16.msra.mxu0 %v4580_v37  ;;  %3798 = vmatpush1.bf16.msra.mxu1 %v4584_v45 }
 0x293   :  { %3768 = vmatprep.subr.bf16.mxu0 %v4586_v46  ;;  %3800 = vmatprep.subr.bf16.mxu1 %v4589_v50 }
 0x296   :  { %3770 = vmatpush1.bf16.msra.mxu0 %v4592_v3  ;;  %3802 = vmatpush1.bf16.msra.mxu1 %v4596_v6 }
 0x297   :  { %3804 = vmatprep.subr.bf16.mxu0 %v4598_v10  ;;  %3808 = vmatprep.subr.bf16.mxu1 %v4602_v15 }
 0x34c   :  { %v1241_v58 = vpop.f32.mrb[4].mxu0  ;;  %v1312_v60 = vpop.f32.mrb[4].mxu1 }
 0x34d   :  { %v1317_v56 = vadd.f32 %v1241_v58, %v4663_v59  ;;  %v1243_v5 = vpop.f32.mrb[5].mxu0  ;;  %v1314_v14 = vpop.f32.mrb[5].mxu1  ;;  %v1319_v25 = vadd.f32 %v1312_v60, %v4668_v12  ;;  %v1563_v58 = vrot.slane %v1406_v47, 7  ;;  %v1405_v60 = vld [vmem:[#allocation4 + $0x3] sm:$0x1] }
 0x34e   :  { %v1318_v11 = vadd.f32 %v1243_v5, %v4665_v61  ;;  %v1320_v30 = vadd.f32 %v1314_v14, %v4672_v32  ;;  %v1565_v14 = vrot.slane %v1407_v55, 6 }
 0x34f   :  { %v1321_v24 = vmul.f32 0.5, %v1317_v56 }
 0x350   :  { %v1325_v23 = vmul.f32 0.5, %v1318_v11  ;;  %v1330_v54 = vmul.f32 0.5, %v1320_v30  ;;  %v1408_v11 = vld [vmem:[#allocation4 + $0x1b] sm:$0x1] }
 0x351   :  { %4164 = vtanh.f32 %v1321_v24  ;;  %v1564_v24 = vsel %vm323_vm0, %v1563_v58, %v1405_v60  ;;  %v1412_v58 = vld [vmem:[#allocation4 + $0x3b] sm:$0x1] }
 0x352   :  { %4166 = vtanh.f32 %v1325_v23  ;;  %v1409_v23 = vld [vmem:[#allocation4 + $0x23] sm:$0x1] }
 0x353   :  { %4168 = vtanh.f32 %v1319_v25  ;;  %v1567_v25 = vrot.slane %v1408_v11, 5 }
 0x354   :  { %4170 = vtanh.f32 %v1330_v54  ;;  %v1566_v54 = vsel %vm326_vm1, %v1565_v14, %v1564_v24  ;;  %v1575_v24 = vrot.slane %v1412_v58, 1 }
 0x35b   :  { %v4165_v34 = vpop.eup %4164 }
 0x35c   :  { %v4167_v38 = vpop.eup %4166  ;;  %v1323_v41 = vadd.f32 1.0, %v4165_v34  ;;  %v1410_v34 = vld [vmem:[#allocation4 + $0x2b] sm:$0x1] }
 0x35d   :  { %v1327_v43 = vadd.f32 1.0, %v4167_v38  ;;  %v4169_v19 = vpop.eup %4168  ;;  %v1569_v38 = vrot.slane %v1409_v23, 4  ;;  %v1571_v47 = vrot.slane %v1410_v34, 3 }
 0x35e   :  { %v1324_v0 = vmul.f32 0.5, %v1323_v41  ;;  %v4171_v30 = vpop.eup %4170 }
 0x35f   :  { %v1328_v48 = vmul.f32 0.5, %v1327_v43  ;;  %v1332_v41 = vadd.f32 1.0, %v4171_v30  ;;  %v1568_v43 = vsel %vm329_vm2, %v1567_v25, %v1566_v54 }
 0x360   :  { %v1335_v49 = vmul.f32 %v4169_v19, %v1324_v0  ;;  %v1570_v0 = vsel %vm332_vm3, %v1569_v38, %v1568_v43 }
 0x361   :  { %v1334_v56 = vmul.f32 %v1328_v48, %v4743_v29  ;;  %v1411_v29 = vld [vmem:[#allocation4 + $0x33] sm:$0x1]  ;;  %v1333_v19 = vmul.f32 0.5, %v1332_v41 }
 0x363   :  { %v4806_v5 = vadd.f32 %v1335_v49, %v1334_v56  ;;  %v1573_v49 = vrot.slane %v1411_v29, 2  ;;  %v1572_v56 = vsel %vm335_vm4, %v1571_v47, %v1570_v0 }
 0x365   :  { %4172 = vtanh.f32 %v4806_v5  ;;  %v1574_v14 = vsel %vm338_vm5, %v1573_v49, %v1572_v56 }
 0x366   :  { %v1576_v43 = vsel %vm341_vm6, %v1575_v24, %v1574_v14 }
 0x36f   :  { %v4173_v48 = vpop.eup %4172 }
 0x370   :  { %v1338_v55 = vmul.f32 %v4173_v48, %v1333_v19 }
 0x372   :  { %v1340_v60 = vcombine.high %v1338_v55, %v1338_v55  ;;  %v1347_v11 = vrot.slane %v1338_v55, %v4685_v62  ;;  %1478 = vmatmul.mubr.f32.vlgmr.msra.gmra.mrb[6].mxu0 %v1338_v55  ;;  %1549 = vmatmul.mubr.f32.vlgmr.msra.gmra.mrb[6].mxu1 %v1338_v55 }
 0x373   :  { %3806 = vmatpush1.bf16.msra.mxu0 %v4610_v33  ;;  %3810 = vmatpush1.bf16.msra.mxu1 %v4615_v36 }
 0x374   :  { %v1354_v23 = vrot.slane %v1340_v60, %v4685_v62  ;;  %v1355_v25 = vcombine.high %v1347_v11, %v1347_v11  ;;  %v1363_v30 = vrot.slane %v1347_v11, %v4685_v62  ;;  %3489 = vst.sshfl [vmem:[#allocation12 + $0x2] sm:$0x1 pattern:$0x73625140] %v1347_v11  ;;  %1643 = vmatprep.mubr.f32.mxu0 %v5148_v42 }
 0x375   :  { %1714 = vmatprep.mubr.f32.mxu1 %v5148_v42  ;;  %3812 = vmatprep.subr.bf16.mxu0 %v4505_v4 }
 0x376   :  { %3844 = vmatprep.subr.bf16.mxu1 %v4507_v8  ;;  %v1356_v54 = vcombine.high %v1354_v23, %v1354_v23  ;;  %v1370_v34 = vrot.slane %v1354_v23, %v4685_v62  ;;  %v1377_v38 = vrot.slane %v1355_v25, %v4685_v62  ;;  %v1385_v41 = vcombine.high %v1363_v30, %v1363_v30 }
 0x377   :  { %3490 = vst.sshfl [vmem:[#allocation12 + $0xa] sm:$0x1 pattern:$0x73625140] %v1355_v25 }
 0x378   :  { %3491 = vst.sshfl [vmem:[#allocation12 + $0x22] sm:$0x1 pattern:$0x73625140] %v1354_v23  ;;  %v1384_v29 = vrot.slane %v1356_v54, %v4685_v62  ;;  %v1386_v47 = vcombine.high %v1370_v34, %v1370_v34  ;;  %v1387_v0 = vcombine.high %v1377_v38, %v1377_v38  ;;  %1399 = vst [vmem:[#allocation12 + $0x12] sm:$0x1] %v1385_v41 }
 0x379   :  { %3492 = vst.sshfl [vmem:[#allocation12 + $0x2a] sm:$0x1 pattern:$0x73625140] %v1356_v54  ;;  %v1810_v41 = vld [vmem:[#allocation4 + $0xc] sm:$0x1] }
 0x37a   :  { %v1388_v19 = vcombine.high %v1384_v29, %v1384_v29  ;;  %1400 = vst [vmem:[#allocation12 + $0x1a] sm:$0x1] %v1387_v0  ;;  %1403 = vst [vmem:[#allocation12 + $0x32] sm:$0x1] %v1386_v47  ;;  %3493 = vmatmul.mubr.msk.f32.vlgmr.msra.gmra.mrb[6].mxu0 %vm343_vm7, %v1576_v43  ;;  %3494 = vmatmul.mubr.msk.f32.vlgmr.msra.gmra.mrb[6].mxu1 %vm343_vm7, %v1576_v43 }
 0x37b   :  { %3814 = vmatpush1.bf16.msra.mxu0 %v4509_v9  ;;  %3846 = vmatpush1.bf16.msra.mxu1 %v4512_v13 }
 0x37c   :  { %1404 = vst [vmem:[#allocation12 + $0x3a] sm:$0x1] %v1388_v19  ;;  %3816 = vmatprep.subr.bf16.mxu0 %v4516_v17  ;;  %3848 = vmatprep.subr.bf16.mxu1 %v4518_v18  ;;  %v1811_v19 = vld [vmem:[#allocation4 + $0x14] sm:$0x1] }
 0x37d   :  { %1881 = vmatprep.mubr.f32.mxu0 %v5148_v42  ;;  %1952 = vmatprep.mubr.f32.mxu1 %v5148_v42 }
 0x37f   :  { %3818 = vmatpush1.bf16.msra.mxu0 %v4521_v22  ;;  %3850 = vmatpush1.bf16.msra.mxu1 %v4525_v26 }
 0x380   :  { %3820 = vmatprep.subr.bf16.mxu0 %v4527_v27  ;;  %3852 = vmatprep.subr.bf16.mxu1 %v4529_v31 }
 0x383   :  { %3822 = vmatpush1.bf16.msra.mxu0 %v4532_v35  ;;  %3854 = vmatpush1.bf16.msra.mxu1 %v4536_v39 }
 0x384   :  { %3824 = vmatprep.subr.bf16.mxu0 %v4538_v40  ;;  %3856 = vmatprep.subr.bf16.mxu1 %v4541_v44 }
 0x387   :  { %3826 = vmatpush1.bf16.msra.mxu0 %v4544_v51  ;;  %3858 = vmatpush1.bf16.msra.mxu1 %v4548_v52 }
 0x388   :  { %3828 = vmatprep.subr.bf16.mxu0 %v4550_v53  ;;  %3860 = vmatprep.subr.bf16.mxu1 %v4553_v57 }
 0x38b   :  { %3830 = vmatpush1.bf16.msra.mxu0 %v4556_v63  ;;  %3862 = vmatpush1.bf16.msra.mxu1 %v4560_v1 }
 0x38c   :  { %3832 = vmatprep.subr.bf16.mxu0 %v4562_v2  ;;  %3864 = vmatprep.subr.bf16.mxu1 %v4565_v7 }
 0x38f   :  { %3834 = vmatpush1.bf16.msra.mxu0 %v4568_v16  ;;  %3866 = vmatpush1.bf16.msra.mxu1 %v4572_v20 }
 0x390   :  { %3836 = vmatprep.subr.bf16.mxu0 %v4574_v21  ;;  %3868 = vmatprep.subr.bf16.mxu1 %v4577_v28 }
 0x393   :  { %3838 = vmatpush1.bf16.msra.mxu0 %v4580_v37  ;;  %3870 = vmatpush1.bf16.msra.mxu1 %v4584_v45 }
 0x394   :  { %3840 = vmatprep.subr.bf16.mxu0 %v4586_v46  ;;  %3872 = vmatprep.subr.bf16.mxu1 %v4589_v50 }
 0x397   :  { %3842 = vmatpush1.bf16.msra.mxu0 %v4592_v3  ;;  %3874 = vmatpush1.bf16.msra.mxu1 %v4596_v6 }
 0x398   :  { %3876 = vmatprep.subr.bf16.mxu0 %v4598_v10  ;;  %3880 = vmatprep.subr.bf16.mxu1 %v4602_v15 }
 0x44d   :  { %v1645_v48 = vpop.f32.mrb[6].mxu0  ;;  %v1716_v49 = vpop.f32.mrb[6].mxu1 }
 0x44e   :  { %v1721_v55 = vadd.f32 %v1645_v48, %v4663_v59  ;;  %v1647_v58 = vpop.f32.mrb[7].mxu0  ;;  %v1718_v56 = vpop.f32.mrb[7].mxu1  ;;  %v1723_v24 = vadd.f32 %v1716_v49, %v4668_v12  ;;  %v1967_v48 = vrot.slane %v1810_v41, 7  ;;  %v1809_v49 = vld [vmem:[#allocation4 + $0x4] sm:$0x1] }
 0x44f   :  { %v1722_v60 = vadd.f32 %v1647_v58, %v4665_v61  ;;  %v1724_v23 = vadd.f32 %v1718_v56, %v4672_v32  ;;  %v1969_v56 = vrot.slane %v1811_v19, 6 }
 0x450   :  { %v1725_v11 = vmul.f32 0.5, %v1721_v55 }
 0x451   :  { %v1729_v14 = vmul.f32 0.5, %v1722_v60  ;;  %v1734_v25 = vmul.f32 0.5, %v1724_v23  ;;  %v1812_v60 = vld [vmem:[#allocation4 + $0x1c] sm:$0x1] }
 0x452   :  { %4174 = vtanh.f32 %v1725_v11  ;;  %v1968_v11 = vsel %vm323_vm0, %v1967_v48, %v1809_v49  ;;  %v1816_v48 = vld [vmem:[#allocation4 + $0x3c] sm:$0x1] }
 0x453   :  { %4176 = vtanh.f32 %v1729_v14  ;;  %v1813_v14 = vld [vmem:[#allocation4 + $0x24] sm:$0x1] }
 0x454   :  { %4178 = vtanh.f32 %v1723_v24  ;;  %v1971_v24 = vrot.slane %v1812_v60, 5 }
 0x455   :  { %4180 = vtanh.f32 %v1734_v25  ;;  %v1970_v25 = vsel %vm326_vm1, %v1969_v56, %v1968_v11  ;;  %v1979_v11 = vrot.slane %v1816_v48, 1 }
 0x45c   :  { %v4175_v30 = vpop.eup %4174 }
 0x45d   :  { %v4177_v54 = vpop.eup %4176  ;;  %v1727_v34 = vadd.f32 1.0, %v4175_v30  ;;  %v1814_v30 = vld [vmem:[#allocation4 + $0x2c] sm:$0x1] }
 0x45e   :  { %v1731_v38 = vadd.f32 1.0, %v4177_v54  ;;  %v4179_v29 = vpop.eup %4178  ;;  %v1973_v54 = vrot.slane %v1813_v14, 4  ;;  %v1975_v41 = vrot.slane %v1814_v30, 3 }
 0x45f   :  { %v1728_v43 = vmul.f32 0.5, %v1727_v34  ;;  %v4181_v23 = vpop.eup %4180 }
 0x460   :  { %v1732_v47 = vmul.f32 0.5, %v1731_v38  ;;  %v1736_v34 = vadd.f32 1.0, %v4181_v23  ;;  %v1972_v38 = vsel %vm329_vm2, %v1971_v24, %v1970_v25 }
 0x461   :  { %v1739_v0 = vmul.f32 %v4179_v29, %v1728_v43  ;;  %v1974_v43 = vsel %vm332_vm3, %v1973_v54, %v1972_v38 }
 0x462   :  { %v1738_v55 = vmul.f32 %v1732_v47, %v4806_v5  ;;  %v1815_v5 = vld [vmem:[#allocation4 + $0x34] sm:$0x1]  ;;  %v1737_v29 = vmul.f32 0.5, %v1736_v34 }
 0x464   :  { %v4869_v58 = vadd.f32 %v1739_v0, %v1738_v55  ;;  %v1977_v0 = vrot.slane %v1815_v5, 2  ;;  %v1976_v55 = vsel %vm335_vm4, %v1975_v41, %v1974_v43 }
 0x466   :  { %4182 = vtanh.f32 %v4869_v58  ;;  %v1978_v56 = vsel %vm338_vm5, %v1977_v0, %v1976_v55 }
 0x467   :  { %v1980_v38 = vsel %vm341_vm6, %v1979_v11, %v1978_v56 }
 0x470   :  { %v4183_v47 = vpop.eup %4182 }
 0x471   :  { %v1742_v19 = vmul.f32 %v4183_v47, %v1737_v29 }
 0x473   :  { %v1744_v49 = vcombine.high %v1742_v19, %v1742_v19  ;;  %v1751_v60 = vrot.slane %v1742_v19, %v4685_v62  ;;  %1882 = vmatmul.mubr.f32.vlgmr.msra.gmra.mrb[8].mxu0 %v1742_v19  ;;  %1953 = vmatmul.mubr.f32.vlgmr.msra.gmra.mrb[8].mxu1 %v1742_v19 }
 0x474   :  { %3878 = vmatpush1.bf16.msra.mxu0 %v4610_v33  ;;  %3882 = vmatpush1.bf16.msra.mxu1 %v4615_v36 }
 0x475   :  { %v1758_v14 = vrot.slane %v1744_v49, %v4685_v62  ;;  %v1759_v24 = vcombine.high %v1751_v60, %v1751_v60  ;;  %v1767_v23 = vrot.slane %v1751_v60, %v4685_v62  ;;  %3495 = vst.sshfl [vmem:[#allocation12 + $0x3] sm:$0x1 pattern:$0x73625140] %v1751_v60  ;;  %2047 = vmatprep.mubr.f32.mxu0 %v5148_v42 }
 0x476   :  { %2118 = vmatprep.mubr.f32.mxu1 %v5148_v42  ;;  %3884 = vmatprep.subr.bf16.mxu0 %v4505_v4 }
 0x477   :  { %3916 = vmatprep.subr.bf16.mxu1 %v4507_v8  ;;  %v1760_v25 = vcombine.high %v1758_v14, %v1758_v14  ;;  %v1774_v30 = vrot.slane %v1758_v14, %v4685_v62  ;;  %v1781_v54 = vrot.slane %v1759_v24, %v4685_v62  ;;  %v1789_v34 = vcombine.high %v1767_v23, %v1767_v23 }
 0x478   :  { %3496 = vst.sshfl [vmem:[#allocation12 + $0xb] sm:$0x1 pattern:$0x73625140] %v1759_v24 }
 0x479   :  { %3497 = vst.sshfl [vmem:[#allocation12 + $0x23] sm:$0x1 pattern:$0x73625140] %v1758_v14  ;;  %v1788_v5 = vrot.slane %v1760_v25, %v4685_v62  ;;  %v1790_v41 = vcombine.high %v1774_v30, %v1774_v30  ;;  %v1791_v43 = vcombine.high %v1781_v54, %v1781_v54  ;;  %1803 = vst [vmem:[#allocation12 + $0x13] sm:$0x1] %v1789_v34 }
 0x47a   :  { %3498 = vst.sshfl [vmem:[#allocation12 + $0x2b] sm:$0x1 pattern:$0x73625140] %v1760_v25  ;;  %v2214_v34 = vld [vmem:[#allocation4 + $0xd] sm:$0x1] }
 0x47b   :  { %v1792_v29 = vcombine.high %v1788_v5, %v1788_v5  ;;  %1804 = vst [vmem:[#allocation12 + $0x1b] sm:$0x1] %v1791_v43  ;;  %1807 = vst [vmem:[#allocation12 + $0x33] sm:$0x1] %v1790_v41  ;;  %3499 = vmatmul.mubr.msk.f32.vlgmr.msra.gmra.mrb[8].mxu0 %vm343_vm7, %v1980_v38  ;;  %3500 = vmatmul.mubr.msk.f32.vlgmr.msra.gmra.mrb[8].mxu1 %vm343_vm7, %v1980_v38 }
 0x47c   :  { %3886 = vmatpush1.bf16.msra.mxu0 %v4509_v9  ;;  %3918 = vmatpush1.bf16.msra.mxu1 %v4512_v13 }
 0x47d   :  { %1808 = vst [vmem:[#allocation12 + $0x3b] sm:$0x1] %v1792_v29  ;;  %3888 = vmatprep.subr.bf16.mxu0 %v4516_v17  ;;  %3920 = vmatprep.subr.bf16.mxu1 %v4518_v18  ;;  %v2215_v29 = vld [vmem:[#allocation4 + $0x15] sm:$0x1] }
 0x47e   :  { %2285 = vmatprep.mubr.f32.mxu0 %v5148_v42  ;;  %2356 = vmatprep.mubr.f32.mxu1 %v5148_v42 }
 0x480   :  { %3890 = vmatpush1.bf16.msra.mxu0 %v4521_v22  ;;  %3922 = vmatpush1.bf16.msra.mxu1 %v4525_v26 }
 0x481   :  { %3892 = vmatprep.subr.bf16.mxu0 %v4527_v27  ;;  %3924 = vmatprep.subr.bf16.mxu1 %v4529_v31 }
 0x484   :  { %3894 = vmatpush1.bf16.msra.mxu0 %v4532_v35  ;;  %3926 = vmatpush1.bf16.msra.mxu1 %v4536_v39 }
 0x485   :  { %3896 = vmatprep.subr.bf16.mxu0 %v4538_v40  ;;  %3928 = vmatprep.subr.bf16.mxu1 %v4541_v44 }
 0x488   :  { %3898 = vmatpush1.bf16.msra.mxu0 %v4544_v51  ;;  %3930 = vmatpush1.bf16.msra.mxu1 %v4548_v52 }
 0x489   :  { %3900 = vmatprep.subr.bf16.mxu0 %v4550_v53  ;;  %3932 = vmatprep.subr.bf16.mxu1 %v4553_v57 }
 0x48c   :  { %3902 = vmatpush1.bf16.msra.mxu0 %v4556_v63  ;;  %3934 = vmatpush1.bf16.msra.mxu1 %v4560_v1 }
 0x48d   :  { %3904 = vmatprep.subr.bf16.mxu0 %v4562_v2  ;;  %3936 = vmatprep.subr.bf16.mxu1 %v4565_v7 }
 0x490   :  { %3906 = vmatpush1.bf16.msra.mxu0 %v4568_v16  ;;  %3938 = vmatpush1.bf16.msra.mxu1 %v4572_v20 }
 0x491   :  { %3908 = vmatprep.subr.bf16.mxu0 %v4574_v21  ;;  %3940 = vmatprep.subr.bf16.mxu1 %v4577_v28 }
 0x494   :  { %3910 = vmatpush1.bf16.msra.mxu0 %v4580_v37  ;;  %3942 = vmatpush1.bf16.msra.mxu1 %v4584_v45 }
 0x495   :  { %3912 = vmatprep.subr.bf16.mxu0 %v4586_v46  ;;  %3944 = vmatprep.subr.bf16.mxu1 %v4589_v50 }
 0x498   :  { %3914 = vmatpush1.bf16.msra.mxu0 %v4592_v3  ;;  %3946 = vmatpush1.bf16.msra.mxu1 %v4596_v6 }
 0x499   :  { %3948 = vmatprep.subr.bf16.mxu0 %v4598_v10  ;;  %3952 = vmatprep.subr.bf16.mxu1 %v4602_v15 }
 0x54e   :  { %v2049_v47 = vpop.f32.mrb[8].mxu0  ;;  %v2120_v0 = vpop.f32.mrb[8].mxu1 }
 0x54f   :  { %v2125_v19 = vadd.f32 %v2049_v47, %v4663_v59  ;;  %v2051_v48 = vpop.f32.mrb[9].mxu0  ;;  %v2122_v55 = vpop.f32.mrb[9].mxu1  ;;  %v2127_v11 = vadd.f32 %v2120_v0, %v4668_v12  ;;  %v2371_v47 = vrot.slane %v2214_v34, 7  ;;  %v2213_v0 = vld [vmem:[#allocation4 + $0x5] sm:$0x1] }
 0x550   :  { %v2126_v49 = vadd.f32 %v2051_v48, %v4665_v61  ;;  %v2128_v14 = vadd.f32 %v2122_v55, %v4672_v32  ;;  %v2373_v55 = vrot.slane %v2215_v29, 6 }
 0x551   :  { %v2129_v60 = vmul.f32 0.5, %v2125_v19 }
 0x552   :  { %v2133_v56 = vmul.f32 0.5, %v2126_v49  ;;  %v2138_v24 = vmul.f32 0.5, %v2128_v14  ;;  %v2216_v49 = vld [vmem:[#allocation4 + $0x1d] sm:$0x1] }
 0x553   :  { %4184 = vtanh.f32 %v2129_v60  ;;  %v2372_v60 = vsel %vm323_vm0, %v2371_v47, %v2213_v0  ;;  %v2220_v47 = vld [vmem:[#allocation4 + $0x3d] sm:$0x1] }
 0x554   :  { %4186 = vtanh.f32 %v2133_v56  ;;  %v2217_v56 = vld [vmem:[#allocation4 + $0x25] sm:$0x1] }
 0x555   :  { %4188 = vtanh.f32 %v2127_v11  ;;  %v2375_v11 = vrot.slane %v2216_v49, 5 }
 0x556   :  { %4190 = vtanh.f32 %v2138_v24  ;;  %v2374_v24 = vsel %vm326_vm1, %v2373_v55, %v2372_v60  ;;  %v2383_v60 = vrot.slane %v2220_v47, 1 }
 0x55d   :  { %v4185_v23 = vpop.eup %4184 }
 0x55e   :  { %v4187_v25 = vpop.eup %4186  ;;  %v2131_v30 = vadd.f32 1.0, %v4185_v23  ;;  %v2218_v23 = vld [vmem:[#allocation4 + $0x2d] sm:$0x1] }
 0x55f   :  { %v2135_v54 = vadd.f32 1.0, %v4187_v25  ;;  %v4189_v5 = vpop.eup %4188  ;;  %v2377_v25 = vrot.slane %v2217_v56, 4  ;;  %v2379_v34 = vrot.slane %v2218_v23, 3 }
 0x560   :  { %v2132_v38 = vmul.f32 0.5, %v2131_v30  ;;  %v4191_v14 = vpop.eup %4190 }
 0x561   :  { %v2136_v41 = vmul.f32 0.5, %v2135_v54  ;;  %v2140_v30 = vadd.f32 1.0, %v4191_v14  ;;  %v2376_v54 = vsel %vm329_vm2, %v2375_v11, %v2374_v24 }
 0x562   :  { %v2143_v43 = vmul.f32 %v4189_v5, %v2132_v38  ;;  %v2378_v38 = vsel %vm332_vm3, %v2377_v25, %v2376_v54 }
 0x563   :  { %v2142_v19 = vmul.f32 %v2136_v41, %v4869_v58  ;;  %v2219_v58 = vld [vmem:[#allocation4 + $0x35] sm:$0x1]  ;;  %v2141_v5 = vmul.f32 0.5, %v2140_v30 }
 0x565   :  { %v4932_v48 = vadd.f32 %v2143_v43, %v2142_v19  ;;  %v2381_v43 = vrot.slane %v2219_v58, 2  ;;  %v2380_v19 = vsel %vm335_vm4, %v2379_v34, %v2378_v38 }
 0x567   :  { %4192 = vtanh.f32 %v4932_v48  ;;  %v2382_v55 = vsel %vm338_vm5, %v2381_v43, %v2380_v19 }
 0x568   :  { %v2384_v54 = vsel %vm341_vm6, %v2383_v60, %v2382_v55 }
 0x571   :  { %v4193_v41 = vpop.eup %4192 }
 0x572   :  { %v2146_v29 = vmul.f32 %v4193_v41, %v2141_v5 }
 0x574   :  { %v2148_v0 = vcombine.high %v2146_v29, %v2146_v29  ;;  %v2155_v49 = vrot.slane %v2146_v29, %v4685_v62  ;;  %2286 = vmatmul.mubr.f32.vlgmr.msra.gmra.mrb[10].mxu0 %v2146_v29  ;;  %2357 = vmatmul.mubr.f32.vlgmr.msra.gmra.mrb[10].mxu1 %v2146_v29 }
 0x575   :  { %3950 = vmatpush1.bf16.msra.mxu0 %v4610_v33  ;;  %3954 = vmatpush1.bf16.msra.mxu1 %v4615_v36 }
 0x576   :  { %v2162_v56 = vrot.slane %v2148_v0, %v4685_v62  ;;  %v2163_v11 = vcombine.high %v2155_v49, %v2155_v49  ;;  %v2171_v14 = vrot.slane %v2155_v49, %v4685_v62  ;;  %3501 = vst.sshfl [vmem:[#allocation12 + $0x4] sm:$0x1 pattern:$0x73625140] %v2155_v49  ;;  %2451 = vmatprep.mubr.f32.mxu0 %v5148_v42 }
 0x577   :  { %2522 = vmatprep.mubr.f32.mxu1 %v5148_v42  ;;  %3956 = vmatprep.subr.bf16.mxu0 %v4505_v4 }
 0x578   :  { %3988 = vmatprep.subr.bf16.mxu1 %v4507_v8  ;;  %v2164_v24 = vcombine.high %v2162_v56, %v2162_v56  ;;  %v2178_v23 = vrot.slane %v2162_v56, %v4685_v62  ;;  %v2185_v25 = vrot.slane %v2163_v11, %v4685_v62  ;;  %v2193_v30 = vcombine.high %v2171_v14, %v2171_v14 }
 0x579   :  { %3502 = vst.sshfl [vmem:[#allocation12 + $0xc] sm:$0x1 pattern:$0x73625140] %v2163_v11 }
 0x57a   :  { %3503 = vst.sshfl [vmem:[#allocation12 + $0x24] sm:$0x1 pattern:$0x73625140] %v2162_v56  ;;  %v2192_v58 = vrot.slane %v2164_v24, %v4685_v62  ;;  %v2194_v34 = vcombine.high %v2178_v23, %v2178_v23  ;;  %v2195_v38 = vcombine.high %v2185_v25, %v2185_v25  ;;  %2207 = vst [vmem:[#allocation12 + $0x14] sm:$0x1] %v2193_v30 }
 0x57b   :  { %3504 = vst.sshfl [vmem:[#allocation12 + $0x2c] sm:$0x1 pattern:$0x73625140] %v2164_v24  ;;  %v2618_v30 = vld [vmem:[#allocation4 + $0xe] sm:$0x1] }
 0x57c   :  { %v2196_v5 = vcombine.high %v2192_v58, %v2192_v58  ;;  %2208 = vst [vmem:[#allocation12 + $0x1c] sm:$0x1] %v2195_v38  ;;  %2211 = vst [vmem:[#allocation12 + $0x34] sm:$0x1] %v2194_v34  ;;  %3505 = vmatmul.mubr.msk.f32.vlgmr.msra.gmra.mrb[10].mxu0 %vm343_vm7, %v2384_v54  ;;  %3506 = vmatmul.mubr.msk.f32.vlgmr.msra.gmra.mrb[10].mxu1 %vm343_vm7, %v2384_v54 }
 0x57d   :  { %3958 = vmatpush1.bf16.msra.mxu0 %v4509_v9  ;;  %3990 = vmatpush1.bf16.msra.mxu1 %v4512_v13 }
 0x57e   :  { %2212 = vst [vmem:[#allocation12 + $0x3c] sm:$0x1] %v2196_v5  ;;  %3960 = vmatprep.subr.bf16.mxu0 %v4516_v17  ;;  %3992 = vmatprep.subr.bf16.mxu1 %v4518_v18  ;;  %v2619_v5 = vld [vmem:[#allocation4 + $0x16] sm:$0x1] }
 0x57f   :  { %2689 = vmatprep.mubr.f32.mxu0 %v5148_v42  ;;  %2760 = vmatprep.mubr.f32.mxu1 %v5148_v42 }
 0x581   :  { %3962 = vmatpush1.bf16.msra.mxu0 %v4521_v22  ;;  %3994 = vmatpush1.bf16.msra.mxu1 %v4525_v26 }
 0x582   :  { %3964 = vmatprep.subr.bf16.mxu0 %v4527_v27  ;;  %3996 = vmatprep.subr.bf16.mxu1 %v4529_v31 }
 0x585   :  { %3966 = vmatpush1.bf16.msra.mxu0 %v4532_v35  ;;  %3998 = vmatpush1.bf16.msra.mxu1 %v4536_v39 }
 0x586   :  { %3968 = vmatprep.subr.bf16.mxu0 %v4538_v40  ;;  %4000 = vmatprep.subr.bf16.mxu1 %v4541_v44 }
 0x589   :  { %3970 = vmatpush1.bf16.msra.mxu0 %v4544_v51  ;;  %4002 = vmatpush1.bf16.msra.mxu1 %v4548_v52 }
 0x58a   :  { %3972 = vmatprep.subr.bf16.mxu0 %v4550_v53  ;;  %4004 = vmatprep.subr.bf16.mxu1 %v4553_v57 }
 0x58d   :  { %3974 = vmatpush1.bf16.msra.mxu0 %v4556_v63  ;;  %4006 = vmatpush1.bf16.msra.mxu1 %v4560_v1 }
 0x58e   :  { %3976 = vmatprep.subr.bf16.mxu0 %v4562_v2  ;;  %4008 = vmatprep.subr.bf16.mxu1 %v4565_v7 }
 0x591   :  { %3978 = vmatpush1.bf16.msra.mxu0 %v4568_v16  ;;  %4010 = vmatpush1.bf16.msra.mxu1 %v4572_v20 }
 0x592   :  { %3980 = vmatprep.subr.bf16.mxu0 %v4574_v21  ;;  %4012 = vmatprep.subr.bf16.mxu1 %v4577_v28 }
 0x595   :  { %3982 = vmatpush1.bf16.msra.mxu0 %v4580_v37  ;;  %4014 = vmatpush1.bf16.msra.mxu1 %v4584_v45 }
 0x596   :  { %3984 = vmatprep.subr.bf16.mxu0 %v4586_v46  ;;  %4016 = vmatprep.subr.bf16.mxu1 %v4589_v50 }
 0x599   :  { %3986 = vmatpush1.bf16.msra.mxu0 %v4592_v3  ;;  %4018 = vmatpush1.bf16.msra.mxu1 %v4596_v6 }
 0x59a   :  { %4020 = vmatprep.subr.bf16.mxu0 %v4598_v10  ;;  %4024 = vmatprep.subr.bf16.mxu1 %v4602_v15 }
 0x64f   :  { %v2453_v41 = vpop.f32.mrb[10].mxu0  ;;  %v2524_v43 = vpop.f32.mrb[10].mxu1 }
 0x650   :  { %v2529_v29 = vadd.f32 %v2453_v41, %v4663_v59  ;;  %v2455_v47 = vpop.f32.mrb[11].mxu0  ;;  %v2526_v19 = vpop.f32.mrb[11].mxu1  ;;  %v2531_v60 = vadd.f32 %v2524_v43, %v4668_v12  ;;  %v2775_v41 = vrot.slane %v2618_v30, 7  ;;  %v2617_v43 = vld [vmem:[#allocation4 + $0x6] sm:$0x1] }
 0x651   :  { %v2530_v0 = vadd.f32 %v2455_v47, %v4665_v61  ;;  %v2532_v56 = vadd.f32 %v2526_v19, %v4672_v32  ;;  %v2777_v19 = vrot.slane %v2619_v5, 6 }
 0x652   :  { %v2533_v49 = vmul.f32 0.5, %v2529_v29 }
 0x653   :  { %v2537_v55 = vmul.f32 0.5, %v2530_v0  ;;  %v2542_v11 = vmul.f32 0.5, %v2532_v56  ;;  %v2620_v0 = vld [vmem:[#allocation4 + $0x1e] sm:$0x1] }
 0x654   :  { %4194 = vtanh.f32 %v2533_v49  ;;  %v2776_v49 = vsel %vm323_vm0, %v2775_v41, %v2617_v43  ;;  %v2624_v41 = vld [vmem:[#allocation4 + $0x3e] sm:$0x1] }
 0x655   :  { %4196 = vtanh.f32 %v2537_v55  ;;  %v2621_v55 = vld [vmem:[#allocation4 + $0x26] sm:$0x1] }
 0x656   :  { %4198 = vtanh.f32 %v2531_v60  ;;  %v2779_v60 = vrot.slane %v2620_v0, 5 }
 0x657   :  { %4200 = vtanh.f32 %v2542_v11  ;;  %v2778_v11 = vsel %vm326_vm1, %v2777_v19, %v2776_v49  ;;  %v2787_v49 = vrot.slane %v2624_v41, 1 }
 0x65e   :  { %v4195_v14 = vpop.eup %4194 }
 0x65f   :  { %v4197_v24 = vpop.eup %4196  ;;  %v2535_v23 = vadd.f32 1.0, %v4195_v14  ;;  %v2622_v14 = vld [vmem:[#allocation4 + $0x2e] sm:$0x1] }
 0x660   :  { %v2539_v25 = vadd.f32 1.0, %v4197_v24  ;;  %v4199_v58 = vpop.eup %4198  ;;  %v2781_v24 = vrot.slane %v2621_v55, 4  ;;  %v2783_v30 = vrot.slane %v2622_v14, 3 }
 0x661   :  { %v2536_v54 = vmul.f32 0.5, %v2535_v23  ;;  %v4201_v56 = vpop.eup %4200 }
 0x662   :  { %v2540_v34 = vmul.f32 0.5, %v2539_v25  ;;  %v2544_v23 = vadd.f32 1.0, %v4201_v56  ;;  %v2780_v25 = vsel %vm329_vm2, %v2779_v60, %v2778_v11 }
 0x663   :  { %v2547_v38 = vmul.f32 %v4199_v58, %v2536_v54  ;;  %v2782_v54 = vsel %vm332_vm3, %v2781_v24, %v2780_v25 }
 0x664   :  { %v2546_v29 = vmul.f32 %v2540_v34, %v4932_v48  ;;  %v2623_v48 = vld [vmem:[#allocation4 + $0x36] sm:$0x1]  ;;  %v2545_v58 = vmul.f32 0.5, %v2544_v23 }
 0x666   :  { %v4995_v47 = vadd.f32 %v2547_v38, %v2546_v29  ;;  %v2785_v38 = vrot.slane %v2623_v48, 2  ;;  %v2784_v29 = vsel %vm335_vm4, %v2783_v30, %v2782_v54 }
 0x668   :  { %4202 = vtanh.f32 %v4995_v47  ;;  %v2786_v19 = vsel %vm338_vm5, %v2785_v38, %v2784_v29 }
 0x669   :  { %v2788_v25 = vsel %vm341_vm6, %v2787_v49, %v2786_v19  ;;  %v3028_v49 = vld [vmem:[#allocation4 + $0x3f] sm:$0x1] }
 0x672   :  { %v4203_v34 = vpop.eup %4202 }
 0x673   :  { %v2550_v5 = vmul.f32 %v4203_v34, %v2545_v58 }
 0x675   :  { %v2552_v43 = vcombine.high %v2550_v5, %v2550_v5  ;;  %v2559_v0 = vrot.slane %v2550_v5, %v4685_v62  ;;  %2690 = vmatmul.mubr.f32.vlgmr.msra.gmra.mrb[12].mxu0 %v2550_v5  ;;  %2761 = vmatmul.mubr.f32.vlgmr.msra.gmra.mrb[12].mxu1 %v2550_v5 }
 0x676   :  { %4022 = vmatpush1.bf16.msra.mxu0 %v4610_v33  ;;  %4026 = vmatpush1.bf16.msra.mxu1 %v4615_v36 }
 0x677   :  { %v2566_v55 = vrot.slane %v2552_v43, %v4685_v62  ;;  %v2567_v60 = vcombine.high %v2559_v0, %v2559_v0  ;;  %v2575_v56 = vrot.slane %v2559_v0, %v4685_v62  ;;  %3507 = vst.sshfl [vmem:[#allocation12 + $0x5] sm:$0x1 pattern:$0x73625140] %v2559_v0  ;;  %2855 = vmatprep.mubr.f32.mxu0 %v5148_v42 }
 0x678   :  { %2926 = vmatprep.mubr.f32.mxu1 %v5148_v42  ;;  %4028 = vmatprep.subr.bf16.mxu0 %v4505_v4 }
 0x679   :  { %4060 = vmatprep.subr.bf16.mxu1 %v4507_v8  ;;  %v2568_v11 = vcombine.high %v2566_v55, %v2566_v55  ;;  %v2582_v14 = vrot.slane %v2566_v55, %v4685_v62  ;;  %v2589_v24 = vrot.slane %v2567_v60, %v4685_v62  ;;  %v2597_v23 = vcombine.high %v2575_v56, %v2575_v56 }
 0x67a   :  { %3508 = vst.sshfl [vmem:[#allocation12 + $0xd] sm:$0x1 pattern:$0x73625140] %v2567_v60 }
 0x67b   :  { %3509 = vst.sshfl [vmem:[#allocation12 + $0x25] sm:$0x1 pattern:$0x73625140] %v2566_v55  ;;  %v2596_v48 = vrot.slane %v2568_v11, %v4685_v62  ;;  %v2598_v30 = vcombine.high %v2582_v14, %v2582_v14  ;;  %v2599_v54 = vcombine.high %v2589_v24, %v2589_v24  ;;  %2611 = vst [vmem:[#allocation12 + $0x15] sm:$0x1] %v2597_v23 }
 0x67c   :  { %3510 = vst.sshfl [vmem:[#allocation12 + $0x2d] sm:$0x1 pattern:$0x73625140] %v2568_v11  ;;  %v3191_v14 = vrot.slane %v3028_v49, 1 }
 0x67d   :  { %v2600_v58 = vcombine.high %v2596_v48, %v2596_v48  ;;  %2612 = vst [vmem:[#allocation12 + $0x1d] sm:$0x1] %v2599_v54  ;;  %2615 = vst [vmem:[#allocation12 + $0x35] sm:$0x1] %v2598_v30  ;;  %3511 = vmatmul.mubr.msk.f32.vlgmr.msra.gmra.mrb[12].mxu0 %vm343_vm7, %v2788_v25  ;;  %3512 = vmatmul.mubr.msk.f32.vlgmr.msra.gmra.mrb[12].mxu1 %vm343_vm7, %v2788_v25 }
 0x67e   :  { %4030 = vmatpush1.bf16.msra.mxu0 %v4509_v9  ;;  %4062 = vmatpush1.bf16.msra.mxu1 %v4512_v13 }
 0x67f   :  { %2616 = vst [vmem:[#allocation12 + $0x3d] sm:$0x1] %v2600_v58  ;;  %4032 = vmatprep.subr.bf16.mxu0 %v4516_v17  ;;  %4064 = vmatprep.subr.bf16.mxu1 %v4518_v18 }
 0x680   :  { %3093 = vmatprep.mubr.f32.mxu0 %v5148_v42  ;;  %3164 = vmatprep.mubr.f32.mxu1 %v5148_v42 }
 0x682   :  { %4034 = vmatpush1.bf16.msra.mxu0 %v4521_v22  ;;  %4066 = vmatpush1.bf16.msra.mxu1 %v4525_v26 }
 0x683   :  { %4036 = vmatprep.subr.bf16.mxu0 %v4527_v27  ;;  %4068 = vmatprep.subr.bf16.mxu1 %v4529_v31 }
 0x686   :  { %4038 = vmatpush1.bf16.msra.mxu0 %v4532_v35  ;;  %4070 = vmatpush1.bf16.msra.mxu1 %v4536_v39 }
 0x687   :  { %4040 = vmatprep.subr.bf16.mxu0 %v4538_v40  ;;  %4072 = vmatprep.subr.bf16.mxu1 %v4541_v44 }
 0x68a   :  { %4042 = vmatpush1.bf16.msra.mxu0 %v4544_v51  ;;  %4074 = vmatpush1.bf16.msra.mxu1 %v4548_v52  ;;  %v3022_v52 = vld [vmem:[#allocation4 + $0xf] sm:$0x1] }
 0x68b   :  { %4044 = vmatprep.subr.bf16.mxu0 %v4550_v53  ;;  %4076 = vmatprep.subr.bf16.mxu1 %v4553_v57 }
 0x68e   :  { %4046 = vmatpush1.bf16.msra.mxu0 %v4556_v63  ;;  %4078 = vmatpush1.bf16.msra.mxu1 %v4560_v1 }
 0x68f   :  { %4048 = vmatprep.subr.bf16.mxu0 %v4562_v2  ;;  %4080 = vmatprep.subr.bf16.mxu1 %v4565_v7  ;;  %v3023_v2 = vld [vmem:[#allocation4 + $0x17] sm:$0x1]  ;;  %v3179_v7 = vrot.slane %v3022_v52, 7 }
 0x692   :  { %4050 = vmatpush1.bf16.msra.mxu0 %v4568_v16  ;;  %4082 = vmatpush1.bf16.msra.mxu1 %v4572_v20  ;;  %v3021_v20 = vld [vmem:[#allocation4 + $0x7] sm:$0x1] }
 0x693   :  { %4052 = vmatprep.subr.bf16.mxu0 %v4574_v21  ;;  %4084 = vmatprep.subr.bf16.mxu1 %v4577_v28  ;;  %v3024_v28 = vld [vmem:[#allocation4 + $0x1f] sm:$0x1] }
 0x696   :  { %4054 = vmatpush1.bf16.msra.mxu0 %v4580_v37  ;;  %4086 = vmatpush1.bf16.msra.mxu1 %v4584_v45  ;;  %v3181_v37 = vrot.slane %v3023_v2, 6  ;;  %v3180_v45 = vsel %vm323_vm0, %v3179_v7, %v3021_v20 }
 0x697   :  { %4056 = vmatprep.subr.bf16.mxu0 %v4586_v46  ;;  %4088 = vmatprep.subr.bf16.mxu1 %v4589_v50  ;;  %v3025_v46 = vld [vmem:[#allocation4 + $0x27] sm:$0x1]  ;;  %v3183_v50 = vrot.slane %v3024_v28, 5 }
 0x69a   :  { %4058 = vmatpush1.bf16.msra.mxu0 %v4592_v3  ;;  %4090 = vmatpush1.bf16.msra.mxu1 %v4596_v6  ;;  %v3182_v6 = vsel %vm326_vm1, %v3181_v37, %v3180_v45 }
 0x69b   :  { %4092 = vmatprep.subr.bf16.mxu0 %v4598_v10  ;;  %4096 = vmatprep.subr.bf16.mxu1 %v4602_v15  ;;  %v3026_v10 = vld [vmem:[#allocation4 + $0x2f] sm:$0x1]  ;;  %v3185_v15 = vrot.slane %v3025_v46, 4  ;;  %v3184_v38 = vsel %vm329_vm2, %v3183_v50, %v3182_v6 }
 0x69c   :  { %v3187_v5 = vrot.slane %v3026_v10, 3 }
 0x69d   :  { %v3186_v41 = vsel %vm332_vm3, %v3185_v15, %v3184_v38 }
 0x69e   :  { %v3188_v55 = vsel %vm335_vm4, %v3187_v5, %v3186_v41 }
 0x750   :  { %v2857_v4 = vpop.f32.mrb[12].mxu0  ;;  %v2928_v8 = vpop.f32.mrb[12].mxu1 }
 0x751   :  { %v2933_v9 = vadd.f32 %v2857_v4, %v4663_v59  ;;  %v2859_v13 = vpop.f32.mrb[13].mxu0  ;;  %v2930_v17 = vpop.f32.mrb[13].mxu1  ;;  %v2935_v27 = vadd.f32 %v2928_v8, %v4668_v12 }
 0x752   :  { %v2934_v18 = vadd.f32 %v2859_v13, %v4665_v61  ;;  %v2936_v31 = vadd.f32 %v2930_v17, %v4672_v32 }
 0x753   :  { %v2937_v22 = vmul.f32 0.5, %v2933_v9 }
 0x754   :  { %v2941_v26 = vmul.f32 0.5, %v2934_v18  ;;  %v2946_v35 = vmul.f32 0.5, %v2936_v31 }
 0x755   :  { %4204 = vtanh.f32 %v2937_v22 }
 0x756   :  { %4206 = vtanh.f32 %v2941_v26 }
 0x757   :  { %4208 = vtanh.f32 %v2935_v27 }
 0x758   :  { %4210 = vtanh.f32 %v2946_v35 }
 0x75f   :  { %v4205_v39 = vpop.eup %4204 }
 0x760   :  { %v4207_v40 = vpop.eup %4206  ;;  %v2939_v44 = vadd.f32 1.0, %v4205_v39 }
 0x761   :  { %v2943_v51 = vadd.f32 1.0, %v4207_v40  ;;  %v4209_v57 = vpop.eup %4208 }
 0x762   :  { %v2940_v53 = vmul.f32 0.5, %v2939_v44  ;;  %v4211_v3 = vpop.eup %4210 }
 0x763   :  { %v2944_v63 = vmul.f32 0.5, %v2943_v51  ;;  %v2948_v34 = vadd.f32 1.0, %v4211_v3 }
 0x764   :  { %v2951_v1 = vmul.f32 %v4209_v57, %v2940_v53 }
 0x765   :  { %v2950_v16 = vmul.f32 %v2944_v63, %v4995_v47  ;;  %v3027_v47 = vld [vmem:[#allocation4 + $0x37] sm:$0x1]  ;;  %v2949_v29 = vmul.f32 0.5, %v2948_v34 }
 0x766   :  { %v3189_v0 = vrot.slane %v3027_v47, 2 }
 0x767   :  { %v5058_v21 = vadd.f32 %v2951_v1, %v2950_v16 }
 0x768   :  { %v3190_v11 = vsel %vm338_vm5, %v3189_v0, %v3188_v55 }
 0x769   :  { %4212 = vtanh.f32 %v5058_v21 }
 0x773   :  { %v4213_v43 = vpop.eup %4212 }
 0x774   :  { %v2954_v19 = vmul.f32 %v4213_v43, %v2949_v29 }
 0x776   :  { %v2956_v60 = vcombine.high %v2954_v19, %v2954_v19  ;;  %v2963_v56 = vrot.slane %v2954_v19, %v4685_v62  ;;  %3094 = vmatmul.mubr.f32.vlgmr.msra.gmra.mrb[14].mxu0 %v2954_v19  ;;  %3165 = vmatmul.mubr.f32.vlgmr.msra.gmra.mrb[14].mxu1 %v2954_v19 }
 0x777   :  { %4094 = vmatpush1.bf16.msra.mxu0 %v4610_v33  ;;  %4098 = vmatpush1.bf16.msra.mxu1 %v4615_v36  ;;  %v3192_v36 = vsel %vm341_vm6, %v3191_v14, %v3190_v11 }
 0x778   :  { %v2970_v24 = vrot.slane %v2956_v60, %v4685_v62  ;;  %v2971_v23 = vcombine.high %v2963_v56, %v2963_v56  ;;  %v2979_v25 = vrot.slane %v2963_v56, %v4685_v62  ;;  %3513 = vst.sshfl [vmem:[#allocation12 + $0x6] sm:$0x1 pattern:$0x73625140] %v2963_v56  ;;  %3259 = vmatprep.mubr.f32.mxu0 %v5148_v42 }
 0x779   :  { %3330 = vmatprep.mubr.f32.mxu1 %v5148_v42 }
 0x77a   :  { %v2972_v48 = vcombine.high %v2970_v24, %v2970_v24  ;;  %v2986_v30 = vrot.slane %v2970_v24, %v4685_v62  ;;  %v2993_v33 = vrot.slane %v2971_v23, %v4685_v62  ;;  %v3001_v54 = vcombine.high %v2979_v25, %v2979_v25  ;;  %3514 = vst.sshfl [vmem:[#allocation12 + $0xe] sm:$0x1 pattern:$0x73625140] %v2971_v23 }
 0x77b   :  { %3515 = vst.sshfl [vmem:[#allocation12 + $0x26] sm:$0x1 pattern:$0x73625140] %v2970_v24 }
 0x77c   :  { %v3000_v58 = vrot.slane %v2972_v48, %v4685_v62  ;;  %v3002_v4 = vcombine.high %v2986_v30, %v2986_v30  ;;  %v3003_v8 = vcombine.high %v2993_v33, %v2993_v33  ;;  %3015 = vst [vmem:[#allocation12 + $0x16] sm:$0x1] %v3001_v54  ;;  %3516 = vst.sshfl [vmem:[#allocation12 + $0x2e] sm:$0x1 pattern:$0x73625140] %v2972_v48 }
 0x77e   :  { %v3004_v9 = vcombine.high %v3000_v58, %v3000_v58  ;;  %3016 = vst [vmem:[#allocation12 + $0x1e] sm:$0x1] %v3003_v8  ;;  %3019 = vst [vmem:[#allocation12 + $0x36] sm:$0x1] %v3002_v4  ;;  %3517 = vmatmul.mubr.msk.f32.vlgmr.msra.gmra.mrb[14].mxu0 %vm343_vm7, %v3192_v36  ;;  %3518 = vmatmul.mubr.msk.f32.vlgmr.msra.gmra.mrb[14].mxu1 %vm343_vm7, %v3192_v36 }
 0x780   :  { %3020 = vst [vmem:[#allocation12 + $0x3e] sm:$0x1] %v3004_v9 }
 0x851   :  { %v3261_v42 = vpop.f32.mrb[14].mxu0  ;;  %v3332_v13 = vpop.f32.mrb[14].mxu1 }
 0x852   :  { %v3337_v17 = vadd.f32 %v3261_v42, %v4663_v59  ;;  %v3263_v18 = vpop.f32.mrb[15].mxu0  ;;  %v3334_v22 = vpop.f32.mrb[15].mxu1  ;;  %v3339_v35 = vadd.f32 %v3332_v13, %v4668_v12 }
 0x853   :  { %v3338_v26 = vadd.f32 %v3263_v18, %v4665_v61  ;;  %v3340_v39 = vadd.f32 %v3334_v22, %v4672_v32 }
 0x854   :  { %v3341_v27 = vmul.f32 0.5, %v3337_v17 }
 0x855   :  { %v3345_v31 = vmul.f32 0.5, %v3338_v26  ;;  %v3350_v40 = vmul.f32 0.5, %v3340_v39 }
 0x856   :  { %4214 = vtanh.f32 %v3341_v27 }
 0x857   :  { %4216 = vtanh.f32 %v3345_v31 }
 0x858   :  { %4218 = vtanh.f32 %v3339_v35 }
 0x859   :  { %4220 = vtanh.f32 %v3350_v40 }
 0x860   :  { %v4215_v44 = vpop.eup %4214 }
 0x861   :  { %v4217_v51 = vpop.eup %4216  ;;  %v3343_v52 = vadd.f32 1.0, %v4215_v44 }
 0x862   :  { %v3347_v53 = vadd.f32 1.0, %v4217_v51  ;;  %v4219_v57 = vpop.eup %4218 }
 0x863   :  { %v3344_v59 = vmul.f32 0.5, %v3343_v52  ;;  %v4221_v12 = vpop.eup %4220 }
 0x864   :  { %v3348_v63 = vmul.f32 0.5, %v3347_v53  ;;  %v3352_v7 = vadd.f32 1.0, %v4221_v12 }
 0x865   :  { %v3355_v1 = vmul.f32 %v4219_v57, %v3344_v59 }
 0x866   :  { %v3354_v61 = vmul.f32 %v3348_v63, %v5058_v21  ;;  %v3353_v32 = vmul.f32 0.5, %v3352_v7 }
 0x868   :  { %v3356_v2 = vadd.f32 %v3355_v1, %v3354_v61 }
 0x86a   :  { %4222 = vtanh.f32 %v3356_v2  ;;  %3428 = vst [vmem:[#allocation15] sm:$0xff] %v3356_v2 }
 0x874   :  { %v4223_v16 = vpop.eup %4222 }
 0x875   :  { %v3358_v20 = vmul.f32 %v4223_v16, %v3353_v32 }
 0x877   :  { %v3360_v28 = vcombine.high %v3358_v20, %v3358_v20  ;;  %v3367_v37 = vrot.slane %v3358_v20, %v4685_v62  ;;  %3427 = vst [vmem:[#allocation13] sm:$0xff] %v3358_v20 }
 0x878   :  { %4323 = shalt.err (!%p4320_p8)
}
 0x879   :  { %s4324_s22 = scalar_lea.hbm %s5144_s7, 128 }
 0x87a   :  { %p4325_p9 = scmp.ne.s32.totalorder %s5144_s7, %s4324_s22  ;;  %p4328_p10 = scmp.lt.u32.totalorder %s4324_s22, %s5144_s7 }
 0x87c   :  { %p4330_p11 = pnand %p4328_p10, %p4325_p9 }
 0x87e   :  { %4333 = shalt.err (!%p4330_p11)
}
 0x87f   :  { %3450 = dma.vmem_to_hbm [thread:$0]  %s3448_s13, 128, %s5144_s7, [#allocation14]   ;;  %v3374_v21 = vrot.slane %v3360_v28, %v4685_v62  ;;  %v3375_v45 = vcombine.high %v3367_v37, %v3367_v37  ;;  %v3383_v46 = vrot.slane %v3367_v37, %v4685_v62  ;;  %3519 = vst.sshfl [vmem:[#allocation12 + $0x7] sm:$0x1 pattern:$0x73625140] %v3367_v37 }
 0x880   :  { %s4334_s27 = scalar_lea.vmem %s5085_s17, 128  ;;  %p4339_p13 = scmp.lt.s32.totalorder %s5085_s17, %s5085_s17 }
 0x881   :  { %p4335_p12 = scmp.ne.s32.totalorder %s5085_s17, %s4334_s27  ;;  %p4340_p0 = scmp.lt.s32.totalorder %s4334_s27, %s4334_s27 }
 0x883   :  { %p4341_p1 = por %p4340_p0, %p4339_p13 }
 0x885   :  { %p4342_p2 = pnand %p4341_p1, %p4335_p12 }
 0x887   :  { %4345 = shalt.err (!%p4342_p2)
}
 0x888   :  { %s4346_s9 = scalar_lea.hbm %s5145_s8, 128 }
 0x889   :  { %p4347_p3 = scmp.ne.s32.totalorder %s5145_s8, %s4346_s9  ;;  %p4350_p4 = scmp.lt.u32.totalorder %s4346_s9, %s5145_s8 }
 0x88b   :  { %p4352_p5 = pnand %p4350_p4, %p4347_p3 }
 0x88d   :  { %4355 = shalt.err (!%p4352_p5)
}
 0x88e   :  { %3460 = dma.vmem_to_hbm [thread:$0]  %s5085_s17, 128, %s5145_s8, [#allocation14]   ;;  %v3376_v50 = vcombine.high %v3374_v21, %v3374_v21  ;;  %v3390_v3 = vrot.slane %v3374_v21, %v4685_v62  ;;  %v3397_v6 = vrot.slane %v3375_v45, %v4685_v62  ;;  %v3405_v10 = vcombine.high %v3383_v46, %v3383_v46  ;;  %3520 = vst.sshfl [vmem:[#allocation12 + $0xf] sm:$0x1 pattern:$0x73625140] %v3375_v45 }
 0x88f   :  { %3521 = vst.sshfl [vmem:[#allocation12 + $0x27] sm:$0x1 pattern:$0x73625140] %v3374_v21  ;;  %s4400_s16 = smov [#allocation12]  }
 0x890   :  { %s3434_s4 = sshll.u32 %s4400_s16, 4  ;;  %v3404_v15 = vrot.slane %v3376_v50, %v4685_v62  ;;  %v3406_v34 = vcombine.high %v3390_v3, %v3390_v3  ;;  %v3407_v38 = vcombine.high %v3397_v6, %v3397_v6  ;;  %3419 = vst [vmem:[#allocation12 + $0x17] sm:$0x1] %v3405_v10  ;;  %s3435_s4 = int_to_ptr.vmem [resolvable:$true] %s3434_s4 }
 0x891   :  { %3522 = vst.sshfl [vmem:[#allocation12 + $0x2f] sm:$0x1 pattern:$0x73625140] %v3376_v50  ;;  %s4356_s8 = scalar_lea.vmem %s3435_s4, 1024  ;;  %p4361_p7 = scmp.lt.s32.totalorder %s3435_s4, %s3435_s4 }
 0x892   :  { %v3408_v47 = vcombine.high %v3404_v15, %v3404_v15  ;;  %3420 = vst [vmem:[#allocation12 + $0x1f] sm:$0x1] %v3407_v38  ;;  %3423 = vst [vmem:[#allocation12 + $0x37] sm:$0x1] %v3406_v34  ;;  %p4357_p6 = scmp.ne.s32.totalorder %s3435_s4, %s4356_s8  ;;  %p4362_p8 = scmp.lt.s32.totalorder %s4356_s8, %s4356_s8 }
 0x894   :  { %3424 = vst [vmem:[#allocation12 + $0x3f] sm:$0x1] %v3408_v47  ;;  %p4363_p9 = por %p4362_p8, %p4361_p7 }
 0x896   :  { %p4364_p10 = pnand %p4363_p9, %p4357_p6 }
 0x898   :  { %4367 = shalt.err (!%p4364_p10)
}
 0x899   :  { %s4368_s13 = scalar_lea.hbm %s5143_s6, 1024 }
 0x89a   :  { %p4369_p11 = scmp.ne.s32.totalorder %s5143_s6, %s4368_s13  ;;  %p4372_p12 = scmp.lt.u32.totalorder %s4368_s13, %s5143_s6 }
 0x89c   :  { %p4374_p13 = pnand %p4372_p12, %p4369_p11 }
 0x89e   :  { %4377 = shalt.err (!%p4374_p13)
}
 0x89f   :  { %3440 = dma.vmem_to_hbm [thread:$0]  %s3435_s4, 1024, %s5143_s6, [#allocation6], %s4392_s1, %s4392_s1, %s4393_s28  }
 0x8a0   :  { %4384 = dma.done.wait [#allocation6], 1024  }
 0x8a1   :  { %4385 = vsyncadd [#allocation6], 4294966272 }
 0x8a2   :  { %4386 = dma.done.wait [#allocation14], 256  }
 0x8a3   :  { %4387 = vsyncadd [#allocation14], 4294967040 }
 0x8a4   :  { %3470 = vsyncpa [#allocation5], 1 }
 0x8a5   :  { %3471 = vsyncpa [#allocation8], 1 }
 0x8a6   :  { %3472 = vsyncpa [#allocation11], 1 }
 0x8a7   :  { %3473 = vsyncpa [#allocation6], 1 }
 0x8a8   :  { %3474 = vsyncpa [#allocation14], 1 }

</bundles_post_ra>
